<compile_context>
chip_gen: v7x
topology: tpu7x:2x2x1
jax: 0.10.0
libtpu: 0.0.40
codegen_flags: <defaults>
</compile_context>

<pallas_src>
import math

import jax
import jax.numpy as jnp
from jax import lax
from jax.experimental import pallas as pl
from jax.experimental.pallas import tpu as pltpu

NUM_HEADS = 8


def residual_atten_kernel(x_ref,       # (B, L, E)   channels-last input
                          win_ref,     # (E, 3E)     in_proj weight, transposed
                          bin_ref,     # (1, 3E)     in_proj bias
                          wout_ref,    # (NH, D, E)  out_proj weight, transposed + head-split
                          bout_ref,    # (1, E)      out_proj bias
                          out_ref):    # (B, L, E)
    B, L, E = x_ref.shape
    D = E // NUM_HEADS
    f32 = jnp.float32
    scale = 1.0 / math.sqrt(D)

    x = x_ref[...]                                   # (B, L, E)
    x2 = x.reshape(B * L, E)

    # ---- stacked QKV projection: one (B*L, E) @ (E, 3E) matmul ----
    qkv = jnp.dot(x2, win_ref[...], preferred_element_type=f32) + bin_ref[...]

    # ---- per-head attention (static unroll), batched over B, with the
    # ---- out-projection accumulated head-by-head (K-split of one contraction)
    y = jnp.zeros((B * L, E), f32) + bout_ref[...]
    for h in range(NUM_HEADS):
        q = qkv[:, h * D:(h + 1) * D].reshape(B, L, D) * scale
        k = qkv[:, E + h * D:E + (h + 1) * D].reshape(B, L, D)
        v = qkv[:, 2 * E + h * D:2 * E + (h + 1) * D].reshape(B, L, D)

        s = jnp.einsum('bld,bmd->blm', q, k, preferred_element_type=f32)   # (B, L, L)
        s = s - jnp.max(s, axis=-1, keepdims=True)
        e = jnp.exp(s)
        p = e / jnp.sum(e, axis=-1, keepdims=True)
        o = jnp.einsum('blm,bmd->bld', p, v, preferred_element_type=f32)   # (B, L, D)

        y = y + jnp.dot(o.reshape(B * L, D), wout_ref[h],
                        preferred_element_type=f32)

    # ---- residual + single lane-dense store ----
    out_ref[...] = x + y.reshape(B, L, E)


def residual_atten_forward(x, params):
    """x: (B, channels, L) float32 (PyTorch NCL).  Returns (B, channels, L)."""
    B, E, L = x.shape
    assert E % NUM_HEADS == 0
    D = E // NUM_HEADS

    # ---- glue: layout / parameter reshuffling (no compute) ----
    x_nlc = jnp.transpose(x, (0, 2, 1))                              # (B, L, E)
    w_in = jnp.transpose(params['in_proj_weight'])                   # (E, 3E)
    b_in = params['in_proj_bias'][None, :]                           # (1, 3E)
    w_out = jnp.transpose(params['out_proj_weight']).reshape(NUM_HEADS, D, E)
    b_out = params['out_proj_bias'][None, :]                         # (1, E)

    flops = (2 * B * L * E * 3 * E            # qkv projection
             + 4 * B * NUM_HEADS * L * L * D  # scores + attn*V
             + 2 * B * L * E * E)             # out projection
    bytes_accessed = 4 * (2 * B * L * E + E * 3 * E + 3 * E + E * E + E)

    args = (x_nlc, w_in, b_in, w_out, b_out)
    out_nlc = pl.pallas_call(
        residual_atten_kernel,
        out_shape=jax.ShapeDtypeStruct((B, L, E), jnp.float32),
        in_specs=[pl.BlockSpec(memory_space=pltpu.MemorySpace.VMEM)] * len(args),
        out_specs=pl.BlockSpec(memory_space=pltpu.MemorySpace.VMEM),
        cost_estimate=pl.CostEstimate(flops=flops,
                                      transcendentals=B * NUM_HEADS * L * L,
                                      bytes_accessed=bytes_accessed),
    )(*args)
    return jnp.transpose(out_nlc, (0, 2, 1))                         # (B, E, L)


# ---------------- pure-JAX reference (for validation only) ----------------
def reference_forward(x, p):
    hi = lax.Precision.HIGHEST
    B, E, L = x.shape
    D = E // NUM_HEADS

    y = jnp.transpose(x, (0, 2, 1))                                  # (B, L, E)
    qkv = jnp.einsum('ble,fe->blf', y, p['in_proj_weight'], precision=hi) \
        + p['in_proj_bias']
    q, k, v = qkv[..., :E], qkv[..., E:2 * E], qkv[..., 2 * E:]

    split = lambda t: jnp.transpose(t.reshape(B, L, NUM_HEADS, D), (0, 2, 1, 3))
    q = split(q) / math.sqrt(D)
    k = split(k)
    v = split(v)

    s = jnp.einsum('bhld,bhmd->bhlm', q, k, precision=hi)
    a = jax.nn.softmax(s, axis=-1)
    o = jnp.einsum('bhlm,bhmd->bhld', a, v, precision=hi)
    o = jnp.transpose(o, (0, 2, 1, 3)).reshape(B, L, E)

    y_out = jnp.einsum('ble,fe->blf', o, p['out_proj_weight'], precision=hi) \
        + p['out_proj_bias']
    return x + jnp.transpose(y_out, (0, 2, 1))


def init_params(key, channels):
    E = channels
    ks = jax.random.split(key, 4)
    sc = 1.0 / math.sqrt(E)
    return {
        'in_proj_weight': sc * jax.random.normal(ks[0], (3 * E, E), jnp.float32),
        'in_proj_bias': 0.02 * jax.random.normal(ks[1], (3 * E,), jnp.float32),
        'out_proj_weight': sc * jax.random.normal(ks[2], (E, E), jnp.float32),
        'out_proj_bias': 0.02 * jax.random.normal(ks[3], (E,), jnp.float32),
    }


if __name__ == "__main__":
    B, channels, L = 2, 64, 16          # embed_dim must be divisible by 8 heads
    key = jax.random.PRNGKey(0)
    kp, kx = jax.random.split(key)
    params = init_params(kp, channels)
    x = jax.random.normal(kx, (B, channels, L), jnp.float32)

    out = jax.jit(residual_atten_forward)(x, params)
    out = jax.block_until_ready(out)
    assert out.shape == (B, channels, L), out.shape

    ref = reference_forward(x, params)
    err = float(jnp.max(jnp.abs(out - ref)))
    assert err < 2e-3, f"max abs error vs reference: {err}"
    print("KERNEL_OK")
</pallas_src>

<mosaic_0001>
module attributes {stable_mosaic.version = 11 : i64} {
  func.func @residual_atten_kernel(%arg0: memref<2x16x64xf32, #tpu.memory_space<vmem>>, %arg1: memref<64x192xf32, #tpu.memory_space<vmem>>, %arg2: memref<1x192xf32, #tpu.memory_space<vmem>>, %arg3: memref<8x8x64xf32, #tpu.memory_space<vmem>>, %arg4: memref<1x64xf32, #tpu.memory_space<vmem>>, %arg5: memref<2x16x64xf32, #tpu.memory_space<vmem>>) attributes {dimension_semantics = [], scalar_prefetch = 0 : i64, scratch_operands = 0 : i64, tpu.core_type = #tpu.core_type<tc>} {
    %c0 = arith.constant 0 : index
    %c0_0 = arith.constant 0 : index
    %c0_1 = arith.constant 0 : index
    %0 = vector.load %arg0[%c0, %c0_0, %c0_1] : memref<2x16x64xf32, #tpu.memory_space<vmem>>, vector<2x16x64xf32>
    %1 = vector.shape_cast %0 : vector<2x16x64xf32> to vector<32x64xf32>
    %c0_2 = arith.constant 0 : index
    %c0_3 = arith.constant 0 : index
    %2 = vector.load %arg1[%c0_2, %c0_3] : memref<64x192xf32, #tpu.memory_space<vmem>>, vector<64x192xf32>
    %cst = arith.constant dense<0.000000e+00> : vector<32x192xf32>
    %3 = tpu.matmul %1, %2, %cst {dimension_numbers = #tpu.dot_dimension_numbers<[1], [0], [0], [1], [0, 0, 1, 1], [], []>} : vector<32x64xf32>, vector<64x192xf32>, vector<32x192xf32> -> vector<32x192xf32>
    %c0_4 = arith.constant 0 : index
    %c0_5 = arith.constant 0 : index
    %4 = vector.load %arg2[%c0_4, %c0_5] : memref<1x192xf32, #tpu.memory_space<vmem>>, vector<1x192xf32>
    %5 = vector.broadcast %4 : vector<1x192xf32> to vector<32x192xf32>
    %6 = arith.addf %3, %5 : vector<32x192xf32>
    %cst_6 = arith.constant 0.000000e+00 : f32
    %7 = vector.broadcast %cst_6 : f32 to vector<32x64xf32>
    %c0_7 = arith.constant 0 : index
    %c0_8 = arith.constant 0 : index
    %8 = vector.load %arg4[%c0_7, %c0_8] : memref<1x64xf32, #tpu.memory_space<vmem>>, vector<1x64xf32>
    %9 = vector.broadcast %8 : vector<1x64xf32> to vector<32x64xf32>
    %10 = arith.addf %7, %9 : vector<32x64xf32>
    %11 = vector.extract_strided_slice %6 {offsets = [0, 0], sizes = [32, 8], strides = [1, 1]} : vector<32x192xf32> to vector<32x8xf32>
    %12 = vector.shape_cast %11 : vector<32x8xf32> to vector<2x16x8xf32>
    %cst_9 = arith.constant 0.353553385 : f32
    %13 = vector.broadcast %cst_9 : f32 to vector<2x16x8xf32>
    %14 = arith.mulf %12, %13 : vector<2x16x8xf32>
    %15 = vector.extract_strided_slice %6 {offsets = [0, 64], sizes = [32, 8], strides = [1, 1]} : vector<32x192xf32> to vector<32x8xf32>
    %16 = vector.shape_cast %15 : vector<32x8xf32> to vector<2x16x8xf32>
    %17 = vector.extract_strided_slice %6 {offsets = [0, 128], sizes = [32, 8], strides = [1, 1]} : vector<32x192xf32> to vector<32x8xf32>
    %18 = vector.shape_cast %17 : vector<32x8xf32> to vector<2x16x8xf32>
    "tpu.trace_start"() <{level = 10 : i32, message = "bld,bmd->blm"}> : () -> ()
    %cst_10 = arith.constant dense<0.000000e+00> : vector<2x16x16xf32>
    %19 = tpu.matmul %14, %16, %cst_10 {dimension_numbers = #tpu.dot_dimension_numbers<[2], [2], [1], [1], [0, 0, 0, 1, 1, 1], [0], [0]>} : vector<2x16x8xf32>, vector<2x16x8xf32>, vector<2x16x16xf32> -> vector<2x16x16xf32>
    "tpu.trace_stop"() : () -> ()
    %cst_11 = arith.constant dense<0xFF800000> : vector<2x16xf32>
    %20 = vector.multi_reduction <maximumf>, %19, %cst_11 [2] : vector<2x16x16xf32> to vector<2x16xf32>
    %21 = vector.shape_cast %20 : vector<2x16xf32> to vector<2x16x1xf32>
    %22 = vector.broadcast %21 : vector<2x16x1xf32> to vector<2x16x16xf32>
    %23 = arith.subf %19, %22 : vector<2x16x16xf32>
    %24 = math.exp %23 : vector<2x16x16xf32>
    %cst_12 = arith.constant dense<0.000000e+00> : vector<2x16xf32>
    %25 = vector.multi_reduction <add>, %24, %cst_12 [2] : vector<2x16x16xf32> to vector<2x16xf32>
    %26 = vector.shape_cast %25 : vector<2x16xf32> to vector<2x16x1xf32>
    %27 = vector.broadcast %26 : vector<2x16x1xf32> to vector<2x16x16xf32>
    %28 = arith.divf %24, %27 : vector<2x16x16xf32>
    "tpu.trace_start"() <{level = 10 : i32, message = "blm,bmd->bld"}> : () -> ()
    %cst_13 = arith.constant dense<0.000000e+00> : vector<2x16x8xf32>
    %29 = tpu.matmul %28, %18, %cst_13 {dimension_numbers = #tpu.dot_dimension_numbers<[2], [1], [1], [2], [0, 0, 0, 1, 1, 2], [0], [0]>} : vector<2x16x16xf32>, vector<2x16x8xf32>, vector<2x16x8xf32> -> vector<2x16x8xf32>
    "tpu.trace_stop"() : () -> ()
    %30 = vector.shape_cast %29 : vector<2x16x8xf32> to vector<32x8xf32>
    %c0_14 = arith.constant 0 : index
    %c0_15 = arith.constant 0 : index
    %c0_16 = arith.constant 0 : index
    %31 = vector.load %arg3[%c0_14, %c0_15, %c0_16] : memref<8x8x64xf32, #tpu.memory_space<vmem>>, vector<1x8x64xf32>
    %32 = vector.shape_cast %31 : vector<1x8x64xf32> to vector<8x64xf32>
    %cst_17 = arith.constant dense<0.000000e+00> : vector<32x64xf32>
    %33 = tpu.matmul %30, %32, %cst_17 {dimension_numbers = #tpu.dot_dimension_numbers<[1], [0], [0], [1], [0, 0, 1, 1], [], []>} : vector<32x8xf32>, vector<8x64xf32>, vector<32x64xf32> -> vector<32x64xf32>
    %34 = arith.addf %10, %33 : vector<32x64xf32>
    %35 = vector.extract_strided_slice %6 {offsets = [0, 8], sizes = [32, 8], strides = [1, 1]} : vector<32x192xf32> to vector<32x8xf32>
    %36 = vector.shape_cast %35 : vector<32x8xf32> to vector<2x16x8xf32>
    %cst_18 = arith.constant 0.353553385 : f32
    %37 = vector.broadcast %cst_18 : f32 to vector<2x16x8xf32>
    %38 = arith.mulf %36, %37 : vector<2x16x8xf32>
    %39 = vector.extract_strided_slice %6 {offsets = [0, 72], sizes = [32, 8], strides = [1, 1]} : vector<32x192xf32> to vector<32x8xf32>
    %40 = vector.shape_cast %39 : vector<32x8xf32> to vector<2x16x8xf32>
    %41 = vector.extract_strided_slice %6 {offsets = [0, 136], sizes = [32, 8], strides = [1, 1]} : vector<32x192xf32> to vector<32x8xf32>
    %42 = vector.shape_cast %41 : vector<32x8xf32> to vector<2x16x8xf32>
    "tpu.trace_start"() <{level = 10 : i32, message = "bld,bmd->blm"}> : () -> ()
    %cst_19 = arith.constant dense<0.000000e+00> : vector<2x16x16xf32>
    %43 = tpu.matmul %38, %40, %cst_19 {dimension_numbers = #tpu.dot_dimension_numbers<[2], [2], [1], [1], [0, 0, 0, 1, 1, 1], [0], [0]>} : vector<2x16x8xf32>, vector<2x16x8xf32>, vector<2x16x16xf32> -> vector<2x16x16xf32>
    "tpu.trace_stop"() : () -> ()
    %cst_20 = arith.constant dense<0xFF800000> : vector<2x16xf32>
    %44 = vector.multi_reduction <maximumf>, %43, %cst_20 [2] : vector<2x16x16xf32> to vector<2x16xf32>
    %45 = vector.shape_cast %44 : vector<2x16xf32> to vector<2x16x1xf32>
    %46 = vector.broadcast %45 : vector<2x16x1xf32> to vector<2x16x16xf32>
    %47 = arith.subf %43, %46 : vector<2x16x16xf32>
    %48 = math.exp %47 : vector<2x16x16xf32>
    %cst_21 = arith.constant dense<0.000000e+00> : vector<2x16xf32>
    %49 = vector.multi_reduction <add>, %48, %cst_21 [2] : vector<2x16x16xf32> to vector<2x16xf32>
    %50 = vector.shape_cast %49 : vector<2x16xf32> to vector<2x16x1xf32>
    %51 = vector.broadcast %50 : vector<2x16x1xf32> to vector<2x16x16xf32>
    %52 = arith.divf %48, %51 : vector<2x16x16xf32>
    "tpu.trace_start"() <{level = 10 : i32, message = "blm,bmd->bld"}> : () -> ()
    %cst_22 = arith.constant dense<0.000000e+00> : vector<2x16x8xf32>
    %53 = tpu.matmul %52, %42, %cst_22 {dimension_numbers = #tpu.dot_dimension_numbers<[2], [1], [1], [2], [0, 0, 0, 1, 1, 2], [0], [0]>} : vector<2x16x16xf32>, vector<2x16x8xf32>, vector<2x16x8xf32> -> vector<2x16x8xf32>
    "tpu.trace_stop"() : () -> ()
    %54 = vector.shape_cast %53 : vector<2x16x8xf32> to vector<32x8xf32>
    %c1 = arith.constant 1 : index
    %c0_23 = arith.constant 0 : index
    %c0_24 = arith.constant 0 : index
    %55 = vector.load %arg3[%c1, %c0_23, %c0_24] : memref<8x8x64xf32, #tpu.memory_space<vmem>>, vector<1x8x64xf32>
    %56 = vector.shape_cast %55 : vector<1x8x64xf32> to vector<8x64xf32>
    %cst_25 = arith.constant dense<0.000000e+00> : vector<32x64xf32>
    %57 = tpu.matmul %54, %56, %cst_25 {dimension_numbers = #tpu.dot_dimension_numbers<[1], [0], [0], [1], [0, 0, 1, 1], [], []>} : vector<32x8xf32>, vector<8x64xf32>, vector<32x64xf32> -> vector<32x64xf32>
    %58 = arith.addf %34, %57 : vector<32x64xf32>
    %59 = vector.extract_strided_slice %6 {offsets = [0, 16], sizes = [32, 8], strides = [1, 1]} : vector<32x192xf32> to vector<32x8xf32>
    %60 = vector.shape_cast %59 : vector<32x8xf32> to vector<2x16x8xf32>
    %cst_26 = arith.constant 0.353553385 : f32
    %61 = vector.broadcast %cst_26 : f32 to vector<2x16x8xf32>
    %62 = arith.mulf %60, %61 : vector<2x16x8xf32>
    %63 = vector.extract_strided_slice %6 {offsets = [0, 80], sizes = [32, 8], strides = [1, 1]} : vector<32x192xf32> to vector<32x8xf32>
    %64 = vector.shape_cast %63 : vector<32x8xf32> to vector<2x16x8xf32>
    %65 = vector.extract_strided_slice %6 {offsets = [0, 144], sizes = [32, 8], strides = [1, 1]} : vector<32x192xf32> to vector<32x8xf32>
    %66 = vector.shape_cast %65 : vector<32x8xf32> to vector<2x16x8xf32>
    "tpu.trace_start"() <{level = 10 : i32, message = "bld,bmd->blm"}> : () -> ()
    %cst_27 = arith.constant dense<0.000000e+00> : vector<2x16x16xf32>
    %67 = tpu.matmul %62, %64, %cst_27 {dimension_numbers = #tpu.dot_dimension_numbers<[2], [2], [1], [1], [0, 0, 0, 1, 1, 1], [0], [0]>} : vector<2x16x8xf32>, vector<2x16x8xf32>, vector<2x16x16xf32> -> vector<2x16x16xf32>
    "tpu.trace_stop"() : () -> ()
    %cst_28 = arith.constant dense<0xFF800000> : vector<2x16xf32>
    %68 = vector.multi_reduction <maximumf>, %67, %cst_28 [2] : vector<2x16x16xf32> to vector<2x16xf32>
    %69 = vector.shape_cast %68 : vector<2x16xf32> to vector<2x16x1xf32>
    %70 = vector.broadcast %69 : vector<2x16x1xf32> to vector<2x16x16xf32>
    %71 = arith.subf %67, %70 : vector<2x16x16xf32>
    %72 = math.exp %71 : vector<2x16x16xf32>
    %cst_29 = arith.constant dense<0.000000e+00> : vector<2x16xf32>
    %73 = vector.multi_reduction <add>, %72, %cst_29 [2] : vector<2x16x16xf32> to vector<2x16xf32>
    %74 = vector.shape_cast %73 : vector<2x16xf32> to vector<2x16x1xf32>
    %75 = vector.broadcast %74 : vector<2x16x1xf32> to vector<2x16x16xf32>
    %76 = arith.divf %72, %75 : vector<2x16x16xf32>
    "tpu.trace_start"() <{level = 10 : i32, message = "blm,bmd->bld"}> : () -> ()
    %cst_30 = arith.constant dense<0.000000e+00> : vector<2x16x8xf32>
    %77 = tpu.matmul %76, %66, %cst_30 {dimension_numbers = #tpu.dot_dimension_numbers<[2], [1], [1], [2], [0, 0, 0, 1, 1, 2], [0], [0]>} : vector<2x16x16xf32>, vector<2x16x8xf32>, vector<2x16x8xf32> -> vector<2x16x8xf32>
    "tpu.trace_stop"() : () -> ()
    %78 = vector.shape_cast %77 : vector<2x16x8xf32> to vector<32x8xf32>
    %c2 = arith.constant 2 : index
    %c0_31 = arith.constant 0 : index
    %c0_32 = arith.constant 0 : index
    %79 = vector.load %arg3[%c2, %c0_31, %c0_32] : memref<8x8x64xf32, #tpu.memory_space<vmem>>, vector<1x8x64xf32>
    %80 = vector.shape_cast %79 : vector<1x8x64xf32> to vector<8x64xf32>
    %cst_33 = arith.constant dense<0.000000e+00> : vector<32x64xf32>
    %81 = tpu.matmul %78, %80, %cst_33 {dimension_numbers = #tpu.dot_dimension_numbers<[1], [0], [0], [1], [0, 0, 1, 1], [], []>} : vector<32x8xf32>, vector<8x64xf32>, vector<32x64xf32> -> vector<32x64xf32>
    %82 = arith.addf %58, %81 : vector<32x64xf32>
    %83 = vector.extract_strided_slice %6 {offsets = [0, 24], sizes = [32, 8], strides = [1, 1]} : vector<32x192xf32> to vector<32x8xf32>
    %84 = vector.shape_cast %83 : vector<32x8xf32> to vector<2x16x8xf32>
    %cst_34 = arith.constant 0.353553385 : f32
    %85 = vector.broadcast %cst_34 : f32 to vector<2x16x8xf32>
    %86 = arith.mulf %84, %85 : vector<2x16x8xf32>
    %87 = vector.extract_strided_slice %6 {offsets = [0, 88], sizes = [32, 8], strides = [1, 1]} : vector<32x192xf32> to vector<32x8xf32>
    %88 = vector.shape_cast %87 : vector<32x8xf32> to vector<2x16x8xf32>
    %89 = vector.extract_strided_slice %6 {offsets = [0, 152], sizes = [32, 8], strides = [1, 1]} : vector<32x192xf32> to vector<32x8xf32>
    %90 = vector.shape_cast %89 : vector<32x8xf32> to vector<2x16x8xf32>
    "tpu.trace_start"() <{level = 10 : i32, message = "bld,bmd->blm"}> : () -> ()
    %cst_35 = arith.constant dense<0.000000e+00> : vector<2x16x16xf32>
    %91 = tpu.matmul %86, %88, %cst_35 {dimension_numbers = #tpu.dot_dimension_numbers<[2], [2], [1], [1], [0, 0, 0, 1, 1, 1], [0], [0]>} : vector<2x16x8xf32>, vector<2x16x8xf32>, vector<2x16x16xf32> -> vector<2x16x16xf32>
    "tpu.trace_stop"() : () -> ()
    %cst_36 = arith.constant dense<0xFF800000> : vector<2x16xf32>
    %92 = vector.multi_reduction <maximumf>, %91, %cst_36 [2] : vector<2x16x16xf32> to vector<2x16xf32>
    %93 = vector.shape_cast %92 : vector<2x16xf32> to vector<2x16x1xf32>
    %94 = vector.broadcast %93 : vector<2x16x1xf32> to vector<2x16x16xf32>
    %95 = arith.subf %91, %94 : vector<2x16x16xf32>
    %96 = math.exp %95 : vector<2x16x16xf32>
    %cst_37 = arith.constant dense<0.000000e+00> : vector<2x16xf32>
    %97 = vector.multi_reduction <add>, %96, %cst_37 [2] : vector<2x16x16xf32> to vector<2x16xf32>
    %98 = vector.shape_cast %97 : vector<2x16xf32> to vector<2x16x1xf32>
    %99 = vector.broadcast %98 : vector<2x16x1xf32> to vector<2x16x16xf32>
    %100 = arith.divf %96, %99 : vector<2x16x16xf32>
    "tpu.trace_start"() <{level = 10 : i32, message = "blm,bmd->bld"}> : () -> ()
    %cst_38 = arith.constant dense<0.000000e+00> : vector<2x16x8xf32>
    %101 = tpu.matmul %100, %90, %cst_38 {dimension_numbers = #tpu.dot_dimension_numbers<[2], [1], [1], [2], [0, 0, 0, 1, 1, 2], [0], [0]>} : vector<2x16x16xf32>, vector<2x16x8xf32>, vector<2x16x8xf32> -> vector<2x16x8xf32>
    "tpu.trace_stop"() : () -> ()
    %102 = vector.shape_cast %101 : vector<2x16x8xf32> to vector<32x8xf32>
    %c3 = arith.constant 3 : index
    %c0_39 = arith.constant 0 : index
    %c0_40 = arith.constant 0 : index
    %103 = vector.load %arg3[%c3, %c0_39, %c0_40] : memref<8x8x64xf32, #tpu.memory_space<vmem>>, vector<1x8x64xf32>
    %104 = vector.shape_cast %103 : vector<1x8x64xf32> to vector<8x64xf32>
    %cst_41 = arith.constant dense<0.000000e+00> : vector<32x64xf32>
    %105 = tpu.matmul %102, %104, %cst_41 {dimension_numbers = #tpu.dot_dimension_numbers<[1], [0], [0], [1], [0, 0, 1, 1], [], []>} : vector<32x8xf32>, vector<8x64xf32>, vector<32x64xf32> -> vector<32x64xf32>
    %106 = arith.addf %82, %105 : vector<32x64xf32>
    %107 = vector.extract_strided_slice %6 {offsets = [0, 32], sizes = [32, 8], strides = [1, 1]} : vector<32x192xf32> to vector<32x8xf32>
    %108 = vector.shape_cast %107 : vector<32x8xf32> to vector<2x16x8xf32>
    %cst_42 = arith.constant 0.353553385 : f32
    %109 = vector.broadcast %cst_42 : f32 to vector<2x16x8xf32>
    %110 = arith.mulf %108, %109 : vector<2x16x8xf32>
    %111 = vector.extract_strided_slice %6 {offsets = [0, 96], sizes = [32, 8], strides = [1, 1]} : vector<32x192xf32> to vector<32x8xf32>
    %112 = vector.shape_cast %111 : vector<32x8xf32> to vector<2x16x8xf32>
    %113 = vector.extract_strided_slice %6 {offsets = [0, 160], sizes = [32, 8], strides = [1, 1]} : vector<32x192xf32> to vector<32x8xf32>
    %114 = vector.shape_cast %113 : vector<32x8xf32> to vector<2x16x8xf32>
    "tpu.trace_start"() <{level = 10 : i32, message = "bld,bmd->blm"}> : () -> ()
    %cst_43 = arith.constant dense<0.000000e+00> : vector<2x16x16xf32>
    %115 = tpu.matmul %110, %112, %cst_43 {dimension_numbers = #tpu.dot_dimension_numbers<[2], [2], [1], [1], [0, 0, 0, 1, 1, 1], [0], [0]>} : vector<2x16x8xf32>, vector<2x16x8xf32>, vector<2x16x16xf32> -> vector<2x16x16xf32>
    "tpu.trace_stop"() : () -> ()
    %cst_44 = arith.constant dense<0xFF800000> : vector<2x16xf32>
    %116 = vector.multi_reduction <maximumf>, %115, %cst_44 [2] : vector<2x16x16xf32> to vector<2x16xf32>
    %117 = vector.shape_cast %116 : vector<2x16xf32> to vector<2x16x1xf32>
    %118 = vector.broadcast %117 : vector<2x16x1xf32> to vector<2x16x16xf32>
    %119 = arith.subf %115, %118 : vector<2x16x16xf32>
    %120 = math.exp %119 : vector<2x16x16xf32>
    %cst_45 = arith.constant dense<0.000000e+00> : vector<2x16xf32>
    %121 = vector.multi_reduction <add>, %120, %cst_45 [2] : vector<2x16x16xf32> to vector<2x16xf32>
    %122 = vector.shape_cast %121 : vector<2x16xf32> to vector<2x16x1xf32>
    %123 = vector.broadcast %122 : vector<2x16x1xf32> to vector<2x16x16xf32>
    %124 = arith.divf %120, %123 : vector<2x16x16xf32>
    "tpu.trace_start"() <{level = 10 : i32, message = "blm,bmd->bld"}> : () -> ()
    %cst_46 = arith.constant dense<0.000000e+00> : vector<2x16x8xf32>
    %125 = tpu.matmul %124, %114, %cst_46 {dimension_numbers = #tpu.dot_dimension_numbers<[2], [1], [1], [2], [0, 0, 0, 1, 1, 2], [0], [0]>} : vector<2x16x16xf32>, vector<2x16x8xf32>, vector<2x16x8xf32> -> vector<2x16x8xf32>
    "tpu.trace_stop"() : () -> ()
    %126 = vector.shape_cast %125 : vector<2x16x8xf32> to vector<32x8xf32>
    %c4 = arith.constant 4 : index
    %c0_47 = arith.constant 0 : index
    %c0_48 = arith.constant 0 : index
    %127 = vector.load %arg3[%c4, %c0_47, %c0_48] : memref<8x8x64xf32, #tpu.memory_space<vmem>>, vector<1x8x64xf32>
    %128 = vector.shape_cast %127 : vector<1x8x64xf32> to vector<8x64xf32>
    %cst_49 = arith.constant dense<0.000000e+00> : vector<32x64xf32>
    %129 = tpu.matmul %126, %128, %cst_49 {dimension_numbers = #tpu.dot_dimension_numbers<[1], [0], [0], [1], [0, 0, 1, 1], [], []>} : vector<32x8xf32>, vector<8x64xf32>, vector<32x64xf32> -> vector<32x64xf32>
    %130 = arith.addf %106, %129 : vector<32x64xf32>
    %131 = vector.extract_strided_slice %6 {offsets = [0, 40], sizes = [32, 8], strides = [1, 1]} : vector<32x192xf32> to vector<32x8xf32>
    %132 = vector.shape_cast %131 : vector<32x8xf32> to vector<2x16x8xf32>
    %cst_50 = arith.constant 0.353553385 : f32
    %133 = vector.broadcast %cst_50 : f32 to vector<2x16x8xf32>
    %134 = arith.mulf %132, %133 : vector<2x16x8xf32>
    %135 = vector.extract_strided_slice %6 {offsets = [0, 104], sizes = [32, 8], strides = [1, 1]} : vector<32x192xf32> to vector<32x8xf32>
    %136 = vector.shape_cast %135 : vector<32x8xf32> to vector<2x16x8xf32>
    %137 = vector.extract_strided_slice %6 {offsets = [0, 168], sizes = [32, 8], strides = [1, 1]} : vector<32x192xf32> to vector<32x8xf32>
    %138 = vector.shape_cast %137 : vector<32x8xf32> to vector<2x16x8xf32>
    "tpu.trace_start"() <{level = 10 : i32, message = "bld,bmd->blm"}> : () -> ()
    %cst_51 = arith.constant dense<0.000000e+00> : vector<2x16x16xf32>
    %139 = tpu.matmul %134, %136, %cst_51 {dimension_numbers = #tpu.dot_dimension_numbers<[2], [2], [1], [1], [0, 0, 0, 1, 1, 1], [0], [0]>} : vector<2x16x8xf32>, vector<2x16x8xf32>, vector<2x16x16xf32> -> vector<2x16x16xf32>
    "tpu.trace_stop"() : () -> ()
    %cst_52 = arith.constant dense<0xFF800000> : vector<2x16xf32>
    %140 = vector.multi_reduction <maximumf>, %139, %cst_52 [2] : vector<2x16x16xf32> to vector<2x16xf32>
    %141 = vector.shape_cast %140 : vector<2x16xf32> to vector<2x16x1xf32>
    %142 = vector.broadcast %141 : vector<2x16x1xf32> to vector<2x16x16xf32>
    %143 = arith.subf %139, %142 : vector<2x16x16xf32>
    %144 = math.exp %143 : vector<2x16x16xf32>
    %cst_53 = arith.constant dense<0.000000e+00> : vector<2x16xf32>
    %145 = vector.multi_reduction <add>, %144, %cst_53 [2] : vector<2x16x16xf32> to vector<2x16xf32>
    %146 = vector.shape_cast %145 : vector<2x16xf32> to vector<2x16x1xf32>
    %147 = vector.broadcast %146 : vector<2x16x1xf32> to vector<2x16x16xf32>
    %148 = arith.divf %144, %147 : vector<2x16x16xf32>
    "tpu.trace_start"() <{level = 10 : i32, message = "blm,bmd->bld"}> : () -> ()
    %cst_54 = arith.constant dense<0.000000e+00> : vector<2x16x8xf32>
    %149 = tpu.matmul %148, %138, %cst_54 {dimension_numbers = #tpu.dot_dimension_numbers<[2], [1], [1], [2], [0, 0, 0, 1, 1, 2], [0], [0]>} : vector<2x16x16xf32>, vector<2x16x8xf32>, vector<2x16x8xf32> -> vector<2x16x8xf32>
    "tpu.trace_stop"() : () -> ()
    %150 = vector.shape_cast %149 : vector<2x16x8xf32> to vector<32x8xf32>
    %c5 = arith.constant 5 : index
    %c0_55 = arith.constant 0 : index
    %c0_56 = arith.constant 0 : index
    %151 = vector.load %arg3[%c5, %c0_55, %c0_56] : memref<8x8x64xf32, #tpu.memory_space<vmem>>, vector<1x8x64xf32>
    %152 = vector.shape_cast %151 : vector<1x8x64xf32> to vector<8x64xf32>
    %cst_57 = arith.constant dense<0.000000e+00> : vector<32x64xf32>
    %153 = tpu.matmul %150, %152, %cst_57 {dimension_numbers = #tpu.dot_dimension_numbers<[1], [0], [0], [1], [0, 0, 1, 1], [], []>} : vector<32x8xf32>, vector<8x64xf32>, vector<32x64xf32> -> vector<32x64xf32>
    %154 = arith.addf %130, %153 : vector<32x64xf32>
    %155 = vector.extract_strided_slice %6 {offsets = [0, 48], sizes = [32, 8], strides = [1, 1]} : vector<32x192xf32> to vector<32x8xf32>
    %156 = vector.shape_cast %155 : vector<32x8xf32> to vector<2x16x8xf32>
    %cst_58 = arith.constant 0.353553385 : f32
    %157 = vector.broadcast %cst_58 : f32 to vector<2x16x8xf32>
    %158 = arith.mulf %156, %157 : vector<2x16x8xf32>
    %159 = vector.extract_strided_slice %6 {offsets = [0, 112], sizes = [32, 8], strides = [1, 1]} : vector<32x192xf32> to vector<32x8xf32>
    %160 = vector.shape_cast %159 : vector<32x8xf32> to vector<2x16x8xf32>
    %161 = vector.extract_strided_slice %6 {offsets = [0, 176], sizes = [32, 8], strides = [1, 1]} : vector<32x192xf32> to vector<32x8xf32>
    %162 = vector.shape_cast %161 : vector<32x8xf32> to vector<2x16x8xf32>
    "tpu.trace_start"() <{level = 10 : i32, message = "bld,bmd->blm"}> : () -> ()
    %cst_59 = arith.constant dense<0.000000e+00> : vector<2x16x16xf32>
    %163 = tpu.matmul %158, %160, %cst_59 {dimension_numbers = #tpu.dot_dimension_numbers<[2], [2], [1], [1], [0, 0, 0, 1, 1, 1], [0], [0]>} : vector<2x16x8xf32>, vector<2x16x8xf32>, vector<2x16x16xf32> -> vector<2x16x16xf32>
    "tpu.trace_stop"() : () -> ()
    %cst_60 = arith.constant dense<0xFF800000> : vector<2x16xf32>
    %164 = vector.multi_reduction <maximumf>, %163, %cst_60 [2] : vector<2x16x16xf32> to vector<2x16xf32>
    %165 = vector.shape_cast %164 : vector<2x16xf32> to vector<2x16x1xf32>
    %166 = vector.broadcast %165 : vector<2x16x1xf32> to vector<2x16x16xf32>
    %167 = arith.subf %163, %166 : vector<2x16x16xf32>
    %168 = math.exp %167 : vector<2x16x16xf32>
    %cst_61 = arith.constant dense<0.000000e+00> : vector<2x16xf32>
    %169 = vector.multi_reduction <add>, %168, %cst_61 [2] : vector<2x16x16xf32> to vector<2x16xf32>
    %170 = vector.shape_cast %169 : vector<2x16xf32> to vector<2x16x1xf32>
    %171 = vector.broadcast %170 : vector<2x16x1xf32> to vector<2x16x16xf32>
    %172 = arith.divf %168, %171 : vector<2x16x16xf32>
    "tpu.trace_start"() <{level = 10 : i32, message = "blm,bmd->bld"}> : () -> ()
    %cst_62 = arith.constant dense<0.000000e+00> : vector<2x16x8xf32>
    %173 = tpu.matmul %172, %162, %cst_62 {dimension_numbers = #tpu.dot_dimension_numbers<[2], [1], [1], [2], [0, 0, 0, 1, 1, 2], [0], [0]>} : vector<2x16x16xf32>, vector<2x16x8xf32>, vector<2x16x8xf32> -> vector<2x16x8xf32>
    "tpu.trace_stop"() : () -> ()
    %174 = vector.shape_cast %173 : vector<2x16x8xf32> to vector<32x8xf32>
    %c6 = arith.constant 6 : index
    %c0_63 = arith.constant 0 : index
    %c0_64 = arith.constant 0 : index
    %175 = vector.load %arg3[%c6, %c0_63, %c0_64] : memref<8x8x64xf32, #tpu.memory_space<vmem>>, vector<1x8x64xf32>
    %176 = vector.shape_cast %175 : vector<1x8x64xf32> to vector<8x64xf32>
    %cst_65 = arith.constant dense<0.000000e+00> : vector<32x64xf32>
    %177 = tpu.matmul %174, %176, %cst_65 {dimension_numbers = #tpu.dot_dimension_numbers<[1], [0], [0], [1], [0, 0, 1, 1], [], []>} : vector<32x8xf32>, vector<8x64xf32>, vector<32x64xf32> -> vector<32x64xf32>
    %178 = arith.addf %154, %177 : vector<32x64xf32>
    %179 = vector.extract_strided_slice %6 {offsets = [0, 56], sizes = [32, 8], strides = [1, 1]} : vector<32x192xf32> to vector<32x8xf32>
    %180 = vector.shape_cast %179 : vector<32x8xf32> to vector<2x16x8xf32>
    %cst_66 = arith.constant 0.353553385 : f32
    %181 = vector.broadcast %cst_66 : f32 to vector<2x16x8xf32>
    %182 = arith.mulf %180, %181 : vector<2x16x8xf32>
    %183 = vector.extract_strided_slice %6 {offsets = [0, 120], sizes = [32, 8], strides = [1, 1]} : vector<32x192xf32> to vector<32x8xf32>
    %184 = vector.shape_cast %183 : vector<32x8xf32> to vector<2x16x8xf32>
    %185 = vector.extract_strided_slice %6 {offsets = [0, 184], sizes = [32, 8], strides = [1, 1]} : vector<32x192xf32> to vector<32x8xf32>
    %186 = vector.shape_cast %185 : vector<32x8xf32> to vector<2x16x8xf32>
    "tpu.trace_start"() <{level = 10 : i32, message = "bld,bmd->blm"}> : () -> ()
    %cst_67 = arith.constant dense<0.000000e+00> : vector<2x16x16xf32>
    %187 = tpu.matmul %182, %184, %cst_67 {dimension_numbers = #tpu.dot_dimension_numbers<[2], [2], [1], [1], [0, 0, 0, 1, 1, 1], [0], [0]>} : vector<2x16x8xf32>, vector<2x16x8xf32>, vector<2x16x16xf32> -> vector<2x16x16xf32>
    "tpu.trace_stop"() : () -> ()
    %cst_68 = arith.constant dense<0xFF800000> : vector<2x16xf32>
    %188 = vector.multi_reduction <maximumf>, %187, %cst_68 [2] : vector<2x16x16xf32> to vector<2x16xf32>
    %189 = vector.shape_cast %188 : vector<2x16xf32> to vector<2x16x1xf32>
    %190 = vector.broadcast %189 : vector<2x16x1xf32> to vector<2x16x16xf32>
    %191 = arith.subf %187, %190 : vector<2x16x16xf32>
    %192 = math.exp %191 : vector<2x16x16xf32>
    %cst_69 = arith.constant dense<0.000000e+00> : vector<2x16xf32>
    %193 = vector.multi_reduction <add>, %192, %cst_69 [2] : vector<2x16x16xf32> to vector<2x16xf32>
    %194 = vector.shape_cast %193 : vector<2x16xf32> to vector<2x16x1xf32>
    %195 = vector.broadcast %194 : vector<2x16x1xf32> to vector<2x16x16xf32>
    %196 = arith.divf %192, %195 : vector<2x16x16xf32>
    "tpu.trace_start"() <{level = 10 : i32, message = "blm,bmd->bld"}> : () -> ()
    %cst_70 = arith.constant dense<0.000000e+00> : vector<2x16x8xf32>
    %197 = tpu.matmul %196, %186, %cst_70 {dimension_numbers = #tpu.dot_dimension_numbers<[2], [1], [1], [2], [0, 0, 0, 1, 1, 2], [0], [0]>} : vector<2x16x16xf32>, vector<2x16x8xf32>, vector<2x16x8xf32> -> vector<2x16x8xf32>
    "tpu.trace_stop"() : () -> ()
    %198 = vector.shape_cast %197 : vector<2x16x8xf32> to vector<32x8xf32>
    %c7 = arith.constant 7 : index
    %c0_71 = arith.constant 0 : index
    %c0_72 = arith.constant 0 : index
    %199 = vector.load %arg3[%c7, %c0_71, %c0_72] : memref<8x8x64xf32, #tpu.memory_space<vmem>>, vector<1x8x64xf32>
    %200 = vector.shape_cast %199 : vector<1x8x64xf32> to vector<8x64xf32>
    %cst_73 = arith.constant dense<0.000000e+00> : vector<32x64xf32>
    %201 = tpu.matmul %198, %200, %cst_73 {dimension_numbers = #tpu.dot_dimension_numbers<[1], [0], [0], [1], [0, 0, 1, 1], [], []>} : vector<32x8xf32>, vector<8x64xf32>, vector<32x64xf32> -> vector<32x64xf32>
    %202 = arith.addf %178, %201 : vector<32x64xf32>
    %203 = vector.shape_cast %202 : vector<32x64xf32> to vector<2x16x64xf32>
    %204 = arith.addf %0, %203 : vector<2x16x64xf32>
    %c0_74 = arith.constant 0 : index
    %c0_75 = arith.constant 0 : index
    %c0_76 = arith.constant 0 : index
    %205 = vector.load %arg5[%c0_74, %c0_75, %c0_76] : memref<2x16x64xf32, #tpu.memory_space<vmem>>, vector<2x16x64xf32>
    tpu.vector_store %arg5[%c0_74, %c0_75, %c0_76], %204 {strides = array<i32>} : memref<2x16x64xf32, #tpu.memory_space<vmem>>, vector<2x16x64xf32>,
    return
  }
}

</mosaic_0001>

<bundles_post_ra>
// kernel: residual_atten_forward.1
= control target key start
LH: loop header
LB: loop body
LE: loop exit
PB: predicated region body
PF: predicated region fallthrough
CT: control target
= control target key end

     0   :  { %10 = vsyncpa [#allocation3], 0  ;;  %s5897_s0 = inlined_call_operand.hbm [shape: f32[2,16,64], index: 0, kind: input, shape index: {}]   ;;  %s5898_s1 = inlined_call_operand.vmem [shape: f32[64,192], index: 1, kind: input, shape index: {}]   ;;  %s5899_s2 = inlined_call_operand.vmem [shape: f32[1,192], index: 2, kind: input, shape index: {}]   ;;  %s5900_s3 = inlined_call_operand.vmem [shape: f32[8,8,64], index: 3, kind: input, shape index: {}]   ;;  %s5901_s4 = inlined_call_operand.vmem [shape: f32[1,64], index: 4, kind: input, shape index: {}]   ;;  %s5902_s5 = inlined_call_operand.hbm [shape: f32[2,16,64], index: 5, kind: output, shape index: {}]  }
   0x1   :  { %11 = vsyncpa [#allocation4], 0  ;;  %s5376_s18 = smov [#allocation2]   ;;  %s5328_s22 = scalar_lea.hbm %s5897_s0, 512 }
   0x2   :  { %s17_s19 = sshll.u32 %s5376_s18, 4  ;;  %p5329_p0 = scmp.ne.s32.totalorder %s5897_s0, %s5328_s22  ;;  %s18_s19 = int_to_ptr.vmem [resolvable:$true] %s17_s19 }
   0x3   :  { %p5332_p1 = scmp.lt.u32.totalorder %s5328_s22, %s5897_s0 }
   0x5   :  { %p5334_p2 = pnand %p5332_p1, %p5329_p0 }
   0x7   :  { %5337 = shalt.err (!%p5334_p2)
}
   0x8   :  { %s5338_s27 = scalar_lea.vmem %s18_s19, 512  ;;  %p5343_p4 = scmp.lt.s32.totalorder %s18_s19, %s18_s19 }
   0x9   :  { %p5339_p3 = scmp.ne.s32.totalorder %s18_s19, %s5338_s27  ;;  %p5344_p5 = scmp.lt.s32.totalorder %s5338_s27, %s5338_s27 }
   0xb   :  { %p5345_p6 = por %p5344_p5, %p5343_p4 }
   0xd   :  { %p5346_p7 = pnand %p5345_p6, %p5339_p3 }
   0xf   :  { %5349 = shalt.err (!%p5346_p7)
}
  0x10   :  { %s5377_s28 = smov 128   ;;  %s5378_s29 = smov 8  }
  0x11   :  { %23 = dma.hbm_to_vmem [thread:$0]  %s5897_s0, 512, %s18_s19, [#allocation3], %s5377_s28, %s5377_s28, %s5378_s29  }
  0x12   :  { %5372 = dma.done.wait [#allocation3], 512  }
  0x13   :  { %5373 = vsyncadd [#allocation3], 4294966784  ;;  %v5379_v0 = vmov 0.0   ;;  %v40_v1 = vld [vmem:[%s5898_s1 + $0x8] sm:$0xff]  ;;  %v42_v2 = vld [vmem:[%s5898_s1 + $0x18] sm:$0xff]  ;;  %vm67_vm0 = vcmask 523264   ;;  %v57_v29 = vlaneseq }
  0x14   :  { %144 = vmatprep.mubr.f32.mxu0 %v5379_v0  ;;  %v39_v3 = vld [vmem:[%s5898_s1] sm:$0xff]  ;;  %v4819_v4 = vpack.c.bf16 %v42_v2, %v40_v1  ;;  %v41_v5 = vld [vmem:[%s5898_s1 + $0x10] sm:$0xff]  ;;  %v44_v6 = vld [vmem:[%s5898_s1 + $0x28] sm:$0xff]  ;;  %vm187_vm1 = vcmask 64512   ;;  %vm364_vm3 = vcmask 130048   ;;  %s5381_s15 = smov 56  }
  0x15   :  { %v46_v7 = vld [vmem:[%s5898_s1 + $0x38] sm:$0xff]  ;;  %v4821_v8 = vpack.c.bf16 %v41_v5, %v39_v3  ;;  %v43_v10 = vld [vmem:[%s5898_s1 + $0x20] sm:$0xff]  ;;  %v45_v11 = vld [vmem:[%s5898_s1 + $0x30] sm:$0xff]  ;;  %v58_v30 = vshrl.u32 %v57_v29, 7  ;;  %s5382_s16 = smov 120   ;;  %s5383_s19 = smov 48  }
  0x16   :  { %v4823_v9 = vpack.c.bf16 %v46_v7, %v44_v6  ;;  %v48_v12 = vld [vmem:[%s5898_s1 + $0x48] sm:$0xff]  ;;  %4820 = vmatprep.subr.bf16.mxu0 %v4819_v4  ;;  %v50_v13 = vld [vmem:[%s5898_s1 + $0x58] sm:$0xff]  ;;  %v4825_v14 = vpack.c.bf16 %v45_v11, %v43_v10  ;;  %v47_v16 = vld [vmem:[%s5898_s1 + $0x40] sm:$0xff]  ;;  %s5384_s22 = smov 112   ;;  %s5385_s23 = smov 40  }
  0x17   :  { %4822 = vmatpush1.bf16.msra.mxu0 %v4821_v8  ;;  %v4827_v15 = vpack.c.bf16 %v50_v13, %v48_v12  ;;  %v49_v17 = vld [vmem:[%s5898_s1 + $0x50] sm:$0xff]  ;;  %v52_v18 = vld [vmem:[%s5898_s1 + $0x68] sm:$0xff]  ;;  %v54_v19 = vld [vmem:[%s5898_s1 + $0x78] sm:$0xff]  ;;  %v59_v31 = vsub.s32 0, %v58_v30  ;;  %v63_v34 = vsub.s32 1, %v58_v30  ;;  %s5386_s24 = smov 104  }
  0x18   :  { %4824 = vmatprep.subr.bf16.mxu0 %v4823_v9  ;;  %v4829_v20 = vpack.c.bf16 %v49_v17, %v47_v16  ;;  %v4831_v21 = vpack.c.bf16 %v54_v19, %v52_v18  ;;  %v51_v22 = vld [vmem:[%s5898_s1 + $0x60] sm:$0xff]  ;;  %v53_v23 = vld [vmem:[%s5898_s1 + $0x70] sm:$0xff]  ;;  %v36_v26 = vld [vmem:[#allocation2 + $0x8] sm:$0xff]  ;;  %s5387_s27 = smov 32   ;;  %s5388_s30 = smov 96  }
  0x19   :  { %v4833_v24 = vpack.c.bf16 %v53_v23, %v51_v22  ;;  %v35_v25 = vld [vmem:[#allocation2] sm:$0xff]  ;;  %v37_v27 = vld [vmem:[#allocation2 + $0x10] sm:$0xff]  ;;  %v38_v28 = vld [vmem:[#allocation2 + $0x18] sm:$0xff]  ;;  %s5389_s8 = smov 24   ;;  %s5390_s9 = smov 88  }
  0x1a   :  { %v55_v32 = vld [vmem:[%s5899_s2] sm:$0x3]  ;;  %s5380_s2 = smov 64   ;;  %vm5513_vm2 = vmpackc.low %vm187_vm1, %vm187_vm1  ;;  %s5391_s12 = smov 16  }
  0x1b   :  { %4826 = vmatpush1.bf16.msra.mxu0 %v4825_v14  ;;  %v60_v33 = vrot.slane %v55_v32, %v59_v31  ;;  %v64_v38 = vrot.slane %v55_v32, %v63_v34  ;;  %s5392_s13 = smov 80   ;;  %s5393_s0 = smov 72  }
  0x1c   :  { %4828 = vmatprep.subr.bf16.mxu0 %v4827_v15 }
  0x1f   :  { %4830 = vmatpush1.bf16.msra.mxu0 %v4829_v20 }
  0x20   :  { %4832 = vmatprep.subr.bf16.mxu0 %v4831_v21 }
  0x23   :  { %4834 = vmatpush1.bf16.msra.mxu0 %v4833_v24 }
  0x26   :  { %4223 = vmatmul.mubr.msk.f32.vlgmr.msra.gmra.mrb[0].mxu0 %vm67_vm0, %v35_v25 }
  0x27   :  { %150 = vmatprep.mubr.f32.mxu0 %v5379_v0 }
  0x2a   :  { %4224 = vmatmul.mubr.msk.f32.gmra.mrb[2].mxu0 %vm67_vm0, %v36_v26 }
  0x2b   :  { %156 = vmatprep.mubr.f32.mxu0 %v5379_v0 }
  0x2e   :  { %4225 = vmatmul.mubr.msk.f32.gmra.mrb[4].mxu0 %vm67_vm0, %v37_v27 }
  0x2f   :  { %162 = vmatprep.mubr.f32.mxu0 %v5379_v0 }
  0x32   :  { %4226 = vmatmul.mubr.msk.f32.gmra.mrb[6].mxu0 %vm67_vm0, %v38_v28 }
  0xf9   :  { %v146_v35 = vpop.f32.mrb[0].mxu0 }
  0xfa   :  { %v147_v36 = vadd.f32 %v146_v35, %v60_v33  ;;  %v148_v37 = vpop.f32.mrb[1].mxu0 }
  0xfb   :  { %v149_v43 = vadd.f32 %v148_v37, %v64_v38 }
  0xfc   :  { %v5495_v39 = vmul.f32 0.35355338, %v147_v36 }
  0xfd   :  { %v152_v40 = vpop.f32.mrb[2].mxu0 }
  0xfe   :  { %v153_v41 = vadd.f32 %v152_v40, %v60_v33  ;;  %v154_v42 = vpop.f32.mrb[3].mxu0  ;;  %4535 = vmatprep.mubr.msk.f32.mxu1 %vm187_vm1, %v5495_v39 }
  0xff   :  { %v155_v44 = vadd.f32 %v154_v42, %v64_v38 }
 0x100   :  { %v5499_v45 = vpack.i.bf16 %v153_v41, %v147_v36  ;;  %v5521_v4 = vmul.f32 0.35355338, %v153_v41 }
 0x101   :  { %v158_v46 = vpop.f32.mrb[4].mxu0  ;;  %v4847_v47 = vpack.c.bf16 %v155_v44, %v149_v43  ;;  %v5501_v48 = vpack.i.bf16 %v155_v44, %v149_v43 }
 0x102   :  { %5047 = vrot.lane.b32.xlu0 %v5499_v45, %s5380_s2  ;;  %v160_v49 = vpop.f32.mrb[5].mxu0  ;;  %v159_v50 = vadd.f32 %v158_v46, %v60_v33 }
 0x103   :  { %v161_v51 = vadd.f32 %v160_v49, %v64_v38 }
 0x104   :  { %v5523_v5 = vmul.f32 0.35355338, %v159_v50 }
 0x105   :  { %v164_v52 = vpop.f32.mrb[6].mxu0 }
 0x106   :  { %v165_v53 = vadd.f32 %v164_v52, %v60_v33  ;;  %v166_v54 = vpop.f32.mrb[7].mxu0 }
 0x107   :  { %v167_v55 = vadd.f32 %v166_v54, %v64_v38  ;;  %v571_v54 = vld [vmem:[%s5900_s3] sm:$0xff] }
 0x108   :  { %v5504_v56 = vpack.i.bf16 %v165_v53, %v159_v50  ;;  %v5533_v6 = vmul.f32 0.35355338, %v165_v53 }
 0x109   :  { %v5506_v57 = vpack.c.bf16 %v167_v55, %v161_v51  ;;  %v5508_v58 = vpack.i.bf16 %v167_v55, %v161_v51 }
 0x10a   :  { %5052 = vrot.lane.b32.xlu0 %v5504_v56, %s5380_s2 }
 0x174   :  { %v5048_v59 = vpop.permute.xlu0 %5047 }
 0x175   :  { %v5050_v60 = vunpack.i.h.bf16 %v5048_v59  ;;  %v5049_v61 = vunpack.i.l.bf16 %v5048_v59 }
 0x177   :  { %v4835_v63 = vpack.c.bf16 %v5050_v60, %v5049_v61 }
 0x179   :  { %4837 = vmatprep.subr.msk.bf16.mxu1 %vm5513_vm2, %v4835_v63 }
 0x17a   :  { %4840 = vmatpush3.bf16.xpose.msk.msra.mxu1 %vm5513_vm2, %v4835_v63 }
 0x17c   :  { %v5053_v0 = vpop.permute.xlu0 %5052 }
 0x17d   :  { %v5055_v1 = vunpack.i.h.bf16 %v5053_v0  ;;  %v5054_v2 = vunpack.i.l.bf16 %v5053_v0 }
 0x17f   :  { %v4841_v3 = vpack.c.bf16 %v5055_v1, %v5054_v2 }
 0x181   :  { %4536 = vmatmul.mubr.msk.f32.vlgmr.msra.gmra.mrb[0].mxu1 %vm187_vm1, %v5521_v4  ;;  %4843 = vmatprep.subr.msk.bf16.mxu1 %vm5513_vm2, %v4841_v3 }
 0x182   :  { %4846 = vmatpush3.bf16.xpose.msk.msra.mxu1 %vm5513_vm2, %v4841_v3  ;;  %4542 = vmatprep.mubr.msk.f32.mxu1 %vm187_vm1, %v5523_v5 }
 0x183   :  { %4848 = vmatprep.subr.bf16.mxu1 %v4847_v47 }
 0x189   :  { %4543 = vmatmul.mubr.msk.f32.vlgmr.msra.gmra.mrb[2].mxu1 %vm187_vm1, %v5533_v6 }
 0x18a   :  { %4850 = vmatpush3.bf16.msra.mxu1 %v4847_v47 }
 0x18b   :  { %4852 = vmatprep.subr.bf16.mxu1 %v5506_v57 }
 0x254   :  { %v4537_v7 = vpop.f32.mrb[0].mxu1 }
 0x255   :  { %v264_v8 = vpop.f32.mrb[1].mxu1  ;;  %v368_v10 = vsel %vm364_vm3, %v4537_v7, -inf }
 0x256   :  { %v365_v9 = vsel %vm364_vm3, %v264_v8, -inf }
 0x257   :  { %366 = vmax.xlane.f32.xlu1 %v365_v9 }
 0x25b   :  { %369 = vmax.xlane.f32.xlu1 %v368_v10 }
 0x25c   :  { %v4544_v11 = vpop.f32.mrb[2].mxu1 }
 0x25d   :  { %v355_v12 = vpop.f32.mrb[3].mxu1  ;;  %v374_v13 = vsel %vm364_vm3, %v4544_v11, -inf }
 0x25e   :  { %v371_v14 = vsel %vm364_vm3, %v355_v12, -inf }
 0x25f   :  { %375 = vmax.xlane.f32.xlu1 %v374_v13  ;;  %372 = vmax.xlane.f32.xlu0 %v371_v14 }
 0x275   :  { %5062 = vrot.lane.b32.xlu0 %v5504_v56, %s5381_s15 }
 0x2e4   :  { %v367_v15 = vpop.xlane.xlu1 %366 }
 0x2e5   :  { %v377_v16 = vsub.f32 %v264_v8, %v367_v15 }
 0x2e7   :  { %v381_v19 = vmul.f32 1.442695, %v377_v16 }
 0x2e8   :  { %v370_v17 = vpop.xlane.xlu1 %369 }
 0x2e9   :  { %v378_v18 = vsub.f32 %v4537_v7, %v370_v17 }
 0x2eb   :  { %v383_v20 = vmul.f32 1.442695, %v378_v18 }
 0x2ec   :  { %v376_v21 = vpop.xlane.xlu1 %375  ;;  %v373_v22 = vpop.xlane.xlu0 %372 }
 0x2ed   :  { %5196 = vpow2.f32 %v383_v20  ;;  %v379_v23 = vsub.f32 %v355_v12, %v373_v22  ;;  %v380_v24 = vsub.f32 %v4544_v11, %v376_v21 }
 0x2ee   :  { %5198 = vpow2.f32 %v381_v19 }
 0x2ef   :  { %v385_v25 = vmul.f32 1.442695, %v379_v23  ;;  %v387_v26 = vmul.f32 1.442695, %v380_v24 }
 0x2f0   :  { %v5063_v50 = vpop.permute.xlu0 %5062 }
 0x2f1   :  { %5200 = vpow2.f32 %v385_v25  ;;  %v5065_v55 = vunpack.i.h.bf16 %v5063_v50  ;;  %v5064_v59 = vunpack.i.l.bf16 %v5063_v50 }
 0x2f2   :  { %5202 = vpow2.f32 %v387_v26 }
 0x2f3   :  { %v4861_v61 = vpack.c.bf16 %v5065_v55, %v5064_v59 }
 0x2f7   :  { %v5197_v27 = vpop.eup %5196 }
 0x2f8   :  { %v392_v28 = vsel %vm364_vm3, %v5197_v27, 0.0  ;;  %v5199_v29 = vpop.eup %5198 }
 0x2f9   :  { %393 = vadd.xlane.f32.xlu1 %v392_v28  ;;  %v389_v30 = vsel %vm364_vm3, %v5199_v29, 0.0 }
 0x2fb   :  { %v5201_v31 = vpop.eup %5200 }
 0x2fc   :  { %v395_v32 = vsel %vm364_vm3, %v5201_v31, 0.0  ;;  %v5203_v33 = vpop.eup %5202 }
 0x2fd   :  { %390 = vadd.xlane.f32.xlu1 %v389_v30  ;;  %v398_v34 = vsel %vm364_vm3, %v5203_v33, 0.0 }
 0x301   :  { %396 = vadd.xlane.f32.xlu1 %v395_v32 }
 0x305   :  { %399 = vadd.xlane.f32.xlu1 %v398_v34 }
 0x316   :  { %5057 = vrot.lane.b32.xlu1 %v5499_v45, %s5381_s15 }
 0x31a   :  { %673 = vrot.lane.b32.xlu1 %v5495_v39, %s5382_s16 }
 0x31e   :  { %675 = vrot.lane.b32.xlu1 %v5521_v4, %s5382_s16 }
 0x322   :  { %764 = vrot.lane.b32.xlu1 %v5523_v5, %s5382_s16 }
 0x326   :  { %766 = vrot.lane.b32.xlu1 %v5533_v6, %s5382_s16 }
 0x386   :  { %v394_v35 = vpop.xlane.xlu1 %393 }
 0x387   :  { %5204 = vrcp.f32 %v394_v35 }
 0x38a   :  { %v391_v36 = vpop.xlane.xlu1 %390 }
 0x38b   :  { %5206 = vrcp.f32 %v391_v36 }
 0x38e   :  { %v397_v37 = vpop.xlane.xlu1 %396 }
 0x38f   :  { %5208 = vrcp.f32 %v397_v37 }
 0x391   :  { %v5205_v40 = vpop.eup %5204 }
 0x392   :  { %v400_v38 = vpop.xlane.xlu1 %399  ;;  %v404_v47 = vmul.f32 %v5205_v40, %v5197_v27 }
 0x393   :  { %5210 = vrcp.f32 %v400_v38 }
 0x395   :  { %v5207_v41 = vpop.eup %5206 }
 0x396   :  { %v5058_v42 = vpop.permute.xlu1 %5057  ;;  %v402_v43 = vmul.f32 %v5207_v41, %v5199_v29  ;;  %v4256_v41 = vld [vmem:[%s5900_s3 + $0x8] sm:$0xff] }
 0x397   :  { %v5060_v44 = vunpack.i.h.bf16 %v5058_v42  ;;  %v5059_v46 = vunpack.i.l.bf16 %v5058_v42 }
 0x398   :  { %4549 = vmatprep.mubr.msk.f32.mxu1 %vm364_vm3, %v402_v43 }
 0x399   :  { %v5209_v49 = vpop.eup %5208  ;;  %v4855_v51 = vpack.c.bf16 %v5060_v44, %v5059_v46  ;;  %4550 = vmatmul.mubr.msk.f32.vlgmr.msra.gmra.mrb[4].mxu1 %vm364_vm3, %v404_v47 }
 0x39a   :  { %4854 = vmatpush3.bf16.msra.mxu1 %v5506_v57  ;;  %v674_v52 = vpop.permute.xlu1 %673  ;;  %v406_v53 = vmul.f32 %v5209_v49, %v5201_v31 }
 0x39b   :  { %4857 = vmatprep.subr.msk.bf16.mxu0 %vm5513_vm2, %v4855_v51  ;;  %4571 = vmatprep.mubr.msk.f32.mxu0 %vm187_vm1, %v674_v52 }
 0x39c   :  { %4556 = vmatprep.mubr.msk.f32.mxu1 %vm364_vm3, %v406_v53  ;;  %4860 = vmatpush3.bf16.xpose.msk.msra.mxu0 %vm5513_vm2, %v4855_v51 }
 0x39d   :  { %v5211_v60 = vpop.eup %5210  ;;  %4559 = vmatprep.subr.mxu1 %v571_v54 }
 0x39e   :  { %v408_v57 = vmul.f32 %v5211_v60, %v5203_v33  ;;  %v676_v63 = vpop.permute.xlu1 %675 }
 0x3a0   :  { %4557 = vmatmul.mubr.msk.f32.vlgmr.msra.gmra.mrb[6].mxu1 %vm364_vm3, %v408_v57 }
 0x3a1   :  { %4560 = vmatpush3.msra.mxu1 %v571_v54 }
 0x3a2   :  { %4863 = vmatprep.subr.msk.bf16.mxu1 %vm5513_vm2, %v4861_v61  ;;  %v765_v2 = vpop.permute.xlu1 %764 }
 0x3a3   :  { %4572 = vmatmul.mubr.msk.f32.vlgmr.msra.gmra.mrb[8].mxu0 %vm187_vm1, %v676_v63 }
 0x3a6   :  { %v767_v12 = vpop.permute.xlu1 %766 }
 0x46c   :  { %v4551_v0 = vpop.f32.mrb[4].mxu1 }
 0x46d   :  { %v481_v1 = vpop.f32.mrb[5].mxu1 }
 0x46e   :  { %4561 = vmatprep.mubr.msk.f32.mxu1 %vm187_vm1, %v481_v1 }
 0x46f   :  { %4562 = vmatmul.mubr.msk.f32.vlgmr.msra.gmra.mrb[8].mxu1 %vm187_vm1, %v4551_v0 }
 0x470   :  { %4866 = vmatpush3.bf16.xpose.msk.msra.mxu1 %vm5513_vm2, %v4861_v61 }
 0x471   :  { %4595 = vmatprep.subr.mxu1 %v4256_v41 }
 0x473   :  { %v4558_v3 = vpop.f32.mrb[6].mxu1 }
 0x474   :  { %v562_v7 = vpop.f32.mrb[7].mxu1 }
 0x475   :  { %4564 = vmatprep.mubr.msk.f32.mxu1 %vm187_vm1, %v562_v7 }
 0x476   :  { %4565 = vmatmul.mubr.msk.f32.gmra.mrb[10].mxu1 %vm187_vm1, %v4558_v3  ;;  %v4573_v8 = vpop.f32.mrb[8].mxu0 }
 0x477   :  { %v755_v9 = vpop.f32.mrb[9].mxu0  ;;  %4578 = vmatprep.mubr.msk.f32.mxu1 %vm187_vm1, %v765_v2  ;;  %v858_v10 = vsel %vm364_vm3, %v4573_v8, -inf }
 0x478   :  { %859 = vmax.xlane.f32.xlu1 %v858_v10  ;;  %v855_v11 = vsel %vm364_vm3, %v755_v9, -inf }
 0x479   :  { %856 = vmax.xlane.f32.xlu0 %v855_v11 }
 0x47a   :  { %4579 = vmatmul.mubr.msk.f32.vlgmr.msra.gmra.mrb[12].mxu1 %vm187_vm1, %v767_v12 }
 0x47b   :  { %4596 = vmatpush3.msra.mxu1 %v4256_v41 }
 0x505   :  { %v860_v18 = vpop.xlane.xlu1 %859 }
 0x506   :  { %v857_v13 = vpop.xlane.xlu0 %856  ;;  %v868_v19 = vsub.f32 %v4573_v8, %v860_v18 }
 0x507   :  { %v867_v14 = vsub.f32 %v755_v9, %v857_v13 }
 0x508   :  { %v873_v20 = vmul.f32 1.442695, %v868_v19 }
 0x509   :  { %v871_v15 = vmul.f32 1.442695, %v867_v14 }
 0x50b   :  { %5212 = vpow2.f32 %v871_v15 }
 0x50c   :  { %5214 = vpow2.f32 %v873_v20 }
 0x515   :  { %v5213_v16 = vpop.eup %5212 }
 0x516   :  { %v879_v17 = vsel %vm364_vm3, %v5213_v16, 0.0  ;;  %v5215_v25 = vpop.eup %5214 }
 0x517   :  { %880 = vadd.xlane.f32.xlu1 %v879_v17  ;;  %v882_v26 = vsel %vm364_vm3, %v5215_v25, 0.0 }
 0x54d   :  { %v4580_v21 = vpop.f32.mrb[12].mxu1 }
 0x54e   :  { %v846_v22 = vpop.f32.mrb[13].mxu1  ;;  %v864_v24 = vsel %vm364_vm3, %v4580_v21, -inf }
 0x54f   :  { %v861_v23 = vsel %vm364_vm3, %v846_v22, -inf }
 0x550   :  { %862 = vmax.xlane.f32.xlu0 %v861_v23 }
 0x554   :  { %865 = vmax.xlane.f32.xlu0 %v864_v24 }
 0x558   :  { %883 = vadd.xlane.f32.xlu0 %v882_v26 }
 0x5a4   :  { %v881_v27 = vpop.xlane.xlu1 %880 }
 0x5a5   :  { %5216 = vrcp.f32 %v881_v27 }
 0x5af   :  { %v5217_v28 = vpop.eup %5216 }
 0x5b0   :  { %v892_v29 = vmul.f32 %v5217_v28, %v5213_v16 }
 0x5b2   :  { %4585 = vmatprep.mubr.msk.f32.mxu0 %vm364_vm3, %v892_v29 }
 0x5dd   :  { %v863_v30 = vpop.xlane.xlu0 %862 }
 0x5de   :  { %v869_v31 = vsub.f32 %v846_v22, %v863_v30 }
 0x5e0   :  { %v875_v32 = vmul.f32 1.442695, %v869_v31 }
 0x5e1   :  { %v866_v33 = vpop.xlane.xlu0 %865 }
 0x5e2   :  { %5218 = vpow2.f32 %v875_v32  ;;  %v870_v34 = vsub.f32 %v4580_v21, %v866_v33 }
 0x5e4   :  { %v877_v35 = vmul.f32 1.442695, %v870_v34 }
 0x5e5   :  { %v884_v42 = vpop.xlane.xlu0 %883 }
 0x5e6   :  { %5220 = vpow2.f32 %v877_v35 }
 0x5e7   :  { %5222 = vrcp.f32 %v884_v42 }
 0x5ec   :  { %v5219_v36 = vpop.eup %5218 }
 0x5ed   :  { %v885_v37 = vsel %vm364_vm3, %v5219_v36, 0.0 }
 0x5ee   :  { %886 = vadd.xlane.f32.xlu1 %v885_v37 }
 0x5f0   :  { %v5221_v38 = vpop.eup %5220 }
 0x5f1   :  { %v888_v40 = vsel %vm364_vm3, %v5221_v38, 0.0  ;;  %v5223_v51 = vpop.eup %5222 }
 0x5f2   :  { %889 = vadd.xlane.f32.xlu0 %v888_v40  ;;  %v894_v63 = vmul.f32 %v5223_v51, %v5215_v25 }
 0x5ff   :  { %5067 = vrot.lane.b32.xlu1 %v5501_v48, %s5382_s16 }
 0x603   :  { %5077 = vrot.lane.b32.xlu1 %v5499_v45, %s5383_s19 }
 0x607   :  { %5082 = vrot.lane.b32.xlu1 %v5504_v56, %s5383_s19  ;;  %s5394_s19 = smov [#allocation5]  }
 0x608   :  { %5072 = vrot.lane.b32.xlu0 %v5508_v58, %s5382_s16  ;;  %s4211_s20 = sshll.u32 %s5394_s19, 4  ;;  %s4212_s20 = int_to_ptr.vmem [resolvable:$true] %s4211_s20 }
 0x609   :  { %p5355_p9 = scmp.lt.s32.totalorder %s4212_s20, %s4212_s20 }
 0x60b   :  { %1182 = vrot.lane.b32.xlu1 %v5521_v4, %s5384_s22 }
 0x60c   :  { %1180 = vrot.lane.b32.xlu0 %v5495_v39, %s5384_s22 }
 0x60f   :  { %1273 = vrot.lane.b32.xlu1 %v5533_v6, %s5384_s22 }
 0x610   :  { %1271 = vrot.lane.b32.xlu0 %v5523_v5, %s5384_s22 }
 0x67b   :  { %v887_v43 = vpop.xlane.xlu1 %886 }
 0x67c   :  { %5224 = vrcp.f32 %v887_v43 }
 0x67f   :  { %v5068_v44 = vpop.permute.xlu1 %5067  ;;  %v890_v46 = vpop.xlane.xlu0 %889 }
 0x680   :  { %v5070_v47 = vunpack.i.h.bf16 %v5068_v44  ;;  %v5069_v49 = vunpack.i.l.bf16 %v5068_v44  ;;  %5226 = vrcp.f32 %v890_v46 }
 0x682   :  { %v4867_v50 = vpack.c.bf16 %v5070_v47, %v5069_v49 }
 0x683   :  { %v5078_v52 = vpop.permute.xlu1 %5077  ;;  %v5073_v53 = vpop.permute.xlu0 %5072 }
 0x684   :  { %v5080_v54 = vunpack.i.h.bf16 %v5078_v52  ;;  %v5079_v55 = vunpack.i.l.bf16 %v5078_v52  ;;  %v5075_v59 = vunpack.i.h.bf16 %v5073_v53  ;;  %v5074_v60 = vunpack.i.l.bf16 %v5073_v53  ;;  %4868 = vmatprep.subr.bf16.mxu0 %v4867_v50 }
 0x685   :  { %4870 = vmatpush3.bf16.msra.mxu0 %v4867_v50 }
 0x686   :  { %v5225_v57 = vpop.eup %5224  ;;  %v4871_v61 = vpack.c.bf16 %v5075_v59, %v5074_v60  ;;  %v4875_v2 = vpack.c.bf16 %v5080_v54, %v5079_v55 }
 0x687   :  { %v5083_v0 = vpop.permute.xlu1 %5082  ;;  %v896_v1 = vmul.f32 %v5225_v57, %v5219_v36  ;;  %v1181_v11 = vpop.permute.xlu0 %1180 }
 0x688   :  { %v5085_v3 = vunpack.i.h.bf16 %v5083_v0  ;;  %v5084_v7 = vunpack.i.l.bf16 %v5083_v0  ;;  %4586 = vmatmul.mubr.msk.f32.vlgmr.msra.gmra.mrb[10].mxu0 %vm364_vm3, %v894_v63  ;;  %4872 = vmatprep.subr.bf16.mxu0 %v4871_v61 }
 0x689   :  { %4874 = vmatpush3.bf16.msra.mxu0 %v4871_v61  ;;  %4592 = vmatprep.mubr.msk.f32.mxu0 %vm364_vm3, %v896_v1 }
 0x68a   :  { %v5227_v8 = vpop.eup %5226  ;;  %v4881_v9 = vpack.c.bf16 %v5085_v3, %v5084_v7  ;;  %4877 = vmatprep.subr.msk.bf16.mxu0 %vm5513_vm2, %v4875_v2 }
 0x68b   :  { %v898_v10 = vmul.f32 %v5227_v8, %v5221_v38  ;;  %v1183_v12 = vpop.permute.xlu1 %1182  ;;  %v1272_v17 = vpop.permute.xlu0 %1271 }
 0x68c   :  { %4883 = vmatprep.subr.msk.bf16.mxu1 %vm5513_vm2, %v4881_v9 }
 0x68d   :  { %4593 = vmatmul.mubr.msk.f32.vlgmr.msra.gmra.mrb[12].mxu0 %vm364_vm3, %v898_v10 }
 0x68e   :  { %4607 = vmatprep.mubr.msk.f32.mxu0 %vm187_vm1, %v1181_v11 }
 0x68f   :  { %v1274_v18 = vpop.permute.xlu1 %1273 }
 0x692   :  { %4880 = vmatpush3.bf16.xpose.msk.msra.mxu0 %vm5513_vm2, %v4875_v2 }
 0x699   :  { %4608 = vmatmul.mubr.msk.f32.vlgmr.msra.gmra.mrb[14].mxu0 %vm187_vm1, %v1183_v12 }
 0x75b   :  { %v4587_v13 = vpop.f32.mrb[10].mxu0 }
 0x75c   :  { %v979_v14 = vpop.f32.mrb[11].mxu0 }
 0x75d   :  { %4597 = vmatprep.mubr.msk.f32.mxu1 %vm187_vm1, %v979_v14 }
 0x75e   :  { %4598 = vmatmul.mubr.msk.f32.vlgmr.msra.gmra.mrb[8].mxu1 %vm187_vm1, %v4587_v13 }
 0x75f   :  { %4886 = vmatpush3.bf16.xpose.msk.msra.mxu1 %vm5513_vm2, %v4881_v9 }
 0x760   :  { %v4594_v15 = vpop.f32.mrb[12].mxu0 }
 0x761   :  { %v1068_v16 = vpop.f32.mrb[13].mxu0 }
 0x762   :  { %4600 = vmatprep.mubr.msk.f32.mxu1 %vm187_vm1, %v1068_v16  ;;  %v4273_v16 = vld [vmem:[%s5900_s3 + $0x10] sm:$0xff] }
 0x763   :  { %4601 = vmatmul.mubr.msk.f32.gmra.mrb[10].mxu1 %vm187_vm1, %v4594_v15 }
 0x764   :  { %4614 = vmatprep.mubr.msk.f32.mxu1 %vm187_vm1, %v1272_v17 }
 0x767   :  { %4615 = vmatmul.mubr.msk.f32.vlgmr.msra.gmra.mrb[14].mxu1 %vm187_vm1, %v1274_v18 }
 0x76c   :  { %v4609_v19 = vpop.f32.mrb[14].mxu0 }
 0x76d   :  { %v1262_v20 = vpop.f32.mrb[15].mxu0  ;;  %v1365_v21 = vsel %vm364_vm3, %v4609_v19, -inf }
 0x76e   :  { %1366 = vmax.xlane.f32.xlu1 %v1365_v21  ;;  %v1362_v22 = vsel %vm364_vm3, %v1262_v20, -inf }
 0x76f   :  { %1363 = vmax.xlane.f32.xlu0 %v1362_v22 }
 0x7fb   :  { %v1367_v28 = vpop.xlane.xlu1 %1366 }
 0x7fc   :  { %v1364_v23 = vpop.xlane.xlu0 %1363  ;;  %v1375_v29 = vsub.f32 %v4609_v19, %v1367_v28 }
 0x7fd   :  { %v1374_v24 = vsub.f32 %v1262_v20, %v1364_v23 }
 0x7fe   :  { %v1380_v30 = vmul.f32 1.442695, %v1375_v29 }
 0x7ff   :  { %v1378_v25 = vmul.f32 1.442695, %v1374_v24 }
 0x801   :  { %5228 = vpow2.f32 %v1378_v25 }
 0x802   :  { %5230 = vpow2.f32 %v1380_v30 }
 0x80b   :  { %v5229_v26 = vpop.eup %5228 }
 0x80c   :  { %v1386_v27 = vsel %vm364_vm3, %v5229_v26, 0.0  ;;  %v5231_v35 = vpop.eup %5230 }
 0x80d   :  { %1387 = vadd.xlane.f32.xlu1 %v1386_v27  ;;  %v1389_v36 = vsel %vm364_vm3, %v5231_v35, 0.0 }
 0x83a   :  { %v4616_v31 = vpop.f32.mrb[14].mxu1 }
 0x83b   :  { %v1353_v32 = vpop.f32.mrb[15].mxu1  ;;  %v1371_v34 = vsel %vm364_vm3, %v4616_v31, -inf }
 0x83c   :  { %v1368_v33 = vsel %vm364_vm3, %v1353_v32, -inf }
 0x83d   :  { %1369 = vmax.xlane.f32.xlu0 %v1368_v33 }
 0x841   :  { %1372 = vmax.xlane.f32.xlu0 %v1371_v34 }
 0x845   :  { %1390 = vadd.xlane.f32.xlu0 %v1389_v36 }
 0x89a   :  { %v1388_v37 = vpop.xlane.xlu1 %1387 }
 0x89b   :  { %5232 = vrcp.f32 %v1388_v37 }
 0x8a5   :  { %v5233_v38 = vpop.eup %5232 }
 0x8a6   :  { %v1399_v40 = vmul.f32 %v5233_v38, %v5229_v26 }
 0x8a8   :  { %4621 = vmatprep.mubr.msk.f32.mxu0 %vm364_vm3, %v1399_v40 }
 0x8ca   :  { %v1370_v41 = vpop.xlane.xlu0 %1369 }
 0x8cb   :  { %v1376_v42 = vsub.f32 %v1353_v32, %v1370_v41 }
 0x8cd   :  { %v1382_v43 = vmul.f32 1.442695, %v1376_v42 }
 0x8ce   :  { %v1373_v44 = vpop.xlane.xlu0 %1372 }
 0x8cf   :  { %5234 = vpow2.f32 %v1382_v43  ;;  %v1377_v46 = vsub.f32 %v4616_v31, %v1373_v44 }
 0x8d1   :  { %v1384_v47 = vmul.f32 1.442695, %v1377_v46 }
 0x8d2   :  { %v1391_v53 = vpop.xlane.xlu0 %1390 }
 0x8d3   :  { %5236 = vpow2.f32 %v1384_v47 }
 0x8d4   :  { %5238 = vrcp.f32 %v1391_v53 }
 0x8d9   :  { %v5235_v49 = vpop.eup %5234 }
 0x8da   :  { %v1392_v50 = vsel %vm364_vm3, %v5235_v49, 0.0 }
 0x8db   :  { %1393 = vadd.xlane.f32.xlu1 %v1392_v50 }
 0x8dd   :  { %v5237_v51 = vpop.eup %5236 }
 0x8de   :  { %v1395_v52 = vsel %vm364_vm3, %v5237_v51, 0.0  ;;  %v5239_v63 = vpop.eup %5238 }
 0x8df   :  { %1396 = vadd.xlane.f32.xlu0 %v1395_v52  ;;  %v1401_v10 = vmul.f32 %v5239_v63, %v5231_v35 }
 0x8ec   :  { %5087 = vrot.lane.b32.xlu1 %v5501_v48, %s5384_s22 }
 0x8f0   :  { %5097 = vrot.lane.b32.xlu1 %v5499_v45, %s5385_s23 }
 0x8f4   :  { %5102 = vrot.lane.b32.xlu1 %v5504_v56, %s5385_s23 }
 0x8f5   :  { %5092 = vrot.lane.b32.xlu0 %v5508_v58, %s5384_s22 }
 0x8f8   :  { %1685 = vrot.lane.b32.xlu1 %v5521_v4, %s5386_s24 }
 0x8f9   :  { %1683 = vrot.lane.b32.xlu0 %v5495_v39, %s5386_s24 }
 0x8fc   :  { %1776 = vrot.lane.b32.xlu1 %v5533_v6, %s5386_s24 }
 0x8fd   :  { %1774 = vrot.lane.b32.xlu0 %v5523_v5, %s5386_s24 }
 0x968   :  { %v1394_v54 = vpop.xlane.xlu1 %1393 }
 0x969   :  { %5240 = vrcp.f32 %v1394_v54 }
 0x96c   :  { %v5088_v55 = vpop.permute.xlu1 %5087  ;;  %v1397_v59 = vpop.xlane.xlu0 %1396 }
 0x96d   :  { %v5090_v60 = vunpack.i.h.bf16 %v5088_v55  ;;  %v5089_v57 = vunpack.i.l.bf16 %v5088_v55  ;;  %5242 = vrcp.f32 %v1397_v59 }
 0x96f   :  { %v4887_v61 = vpack.c.bf16 %v5090_v60, %v5089_v57 }
 0x970   :  { %v5098_v0 = vpop.permute.xlu1 %5097  ;;  %v5093_v1 = vpop.permute.xlu0 %5092 }
 0x971   :  { %v5100_v2 = vunpack.i.h.bf16 %v5098_v0  ;;  %v5099_v3 = vunpack.i.l.bf16 %v5098_v0  ;;  %v5095_v7 = vunpack.i.h.bf16 %v5093_v1  ;;  %v5094_v8 = vunpack.i.l.bf16 %v5093_v1  ;;  %4888 = vmatprep.subr.bf16.mxu0 %v4887_v61 }
 0x972   :  { %4890 = vmatpush3.bf16.msra.mxu0 %v4887_v61 }
 0x973   :  { %v5241_v9 = vpop.eup %5240  ;;  %v4895_v11 = vpack.c.bf16 %v5100_v2, %v5099_v3  ;;  %v4891_v12 = vpack.c.bf16 %v5095_v7, %v5094_v8  ;;  %v4290_v2 = vld [vmem:[%s5900_s3 + $0x18] sm:$0xff] }
 0x974   :  { %v5103_v13 = vpop.permute.xlu1 %5102  ;;  %v1684_v14 = vpop.permute.xlu0 %1683  ;;  %v1403_v15 = vmul.f32 %v5241_v9, %v5235_v49 }
 0x975   :  { %4622 = vmatmul.mubr.msk.f32.vlgmr.msra.gmra.mrb[16].mxu0 %vm364_vm3, %v1401_v10  ;;  %4892 = vmatprep.subr.bf16.mxu1 %v4891_v12  ;;  %v5105_v17 = vunpack.i.h.bf16 %v5103_v13  ;;  %v5104_v18 = vunpack.i.l.bf16 %v5103_v13 }
 0x976   :  { %4897 = vmatprep.subr.msk.bf16.mxu0 %vm5513_vm2, %v4895_v11  ;;  %4894 = vmatpush3.bf16.msra.mxu1 %v4891_v12 }
 0x977   :  { %v5243_v19 = vpop.eup %5242  ;;  %4628 = vmatprep.mubr.msk.f32.mxu1 %vm364_vm3, %v1403_v15  ;;  %4643 = vmatprep.mubr.msk.f32.mxu0 %vm187_vm1, %v1684_v14  ;;  %v4901_v21 = vpack.c.bf16 %v5105_v17, %v5104_v18 }
 0x978   :  { %v1405_v20 = vmul.f32 %v5243_v19, %v5237_v51  ;;  %4631 = vmatprep.subr.mxu1 %v4273_v16  ;;  %v1686_v22 = vpop.permute.xlu1 %1685  ;;  %v1775_v27 = vpop.permute.xlu0 %1774 }
 0x97a   :  { %4629 = vmatmul.mubr.msk.f32.vlgmr.msra.gmra.mrb[16].mxu1 %vm364_vm3, %v1405_v20 }
 0x97b   :  { %4632 = vmatpush3.msra.mxu1 %v4273_v16  ;;  %4900 = vmatpush3.bf16.xpose.msk.msra.mxu0 %vm5513_vm2, %v4895_v11 }
 0x97c   :  { %4903 = vmatprep.subr.msk.bf16.mxu1 %vm5513_vm2, %v4901_v21  ;;  %v1777_v28 = vpop.permute.xlu1 %1776 }
 0x982   :  { %4644 = vmatmul.mubr.msk.f32.vlgmr.msra.gmra.mrb[18].mxu0 %vm187_vm1, %v1686_v22 }
 0xa48   :  { %v4623_v23 = vpop.f32.mrb[16].mxu0 }
 0xa49   :  { %v1484_v24 = vpop.f32.mrb[17].mxu0 }
 0xa4a   :  { %4633 = vmatprep.mubr.msk.f32.mxu1 %vm187_vm1, %v1484_v24 }
 0xa4b   :  { %4634 = vmatmul.mubr.msk.f32.vlgmr.msra.gmra.mrb[8].mxu1 %vm187_vm1, %v4623_v23 }
 0xa4c   :  { %4906 = vmatpush3.bf16.xpose.msk.msra.mxu1 %vm5513_vm2, %v4901_v21 }
 0xa4d   :  { %v4630_v25 = vpop.f32.mrb[16].mxu1  ;;  %4667 = vmatprep.subr.mxu1 %v4290_v2 }
 0xa4e   :  { %v1571_v26 = vpop.f32.mrb[17].mxu1 }
 0xa4f   :  { %4636 = vmatprep.mubr.msk.f32.mxu1 %vm187_vm1, %v1571_v26 }
 0xa50   :  { %4637 = vmatmul.mubr.msk.f32.gmra.mrb[10].mxu1 %vm187_vm1, %v4630_v25 }
 0xa51   :  { %4650 = vmatprep.mubr.msk.f32.mxu1 %vm187_vm1, %v1775_v27 }
 0xa54   :  { %4651 = vmatmul.mubr.msk.f32.vlgmr.msra.gmra.mrb[18].mxu1 %vm187_vm1, %v1777_v28 }
 0xa55   :  { %v4645_v29 = vpop.f32.mrb[18].mxu0  ;;  %4668 = vmatpush3.msra.mxu1 %v4290_v2 }
 0xa56   :  { %v1765_v30 = vpop.f32.mrb[19].mxu0  ;;  %v1868_v31 = vsel %vm364_vm3, %v4645_v29, -inf }
 0xa57   :  { %1869 = vmax.xlane.f32.xlu1 %v1868_v31  ;;  %v1865_v32 = vsel %vm364_vm3, %v1765_v30, -inf }
 0xa58   :  { %1866 = vmax.xlane.f32.xlu0 %v1865_v32 }
 0xae4   :  { %v1870_v38 = vpop.xlane.xlu1 %1869 }
 0xae5   :  { %v1867_v33 = vpop.xlane.xlu0 %1866  ;;  %v1878_v40 = vsub.f32 %v4645_v29, %v1870_v38 }
 0xae6   :  { %v1877_v34 = vsub.f32 %v1765_v30, %v1867_v33 }
 0xae7   :  { %v1883_v41 = vmul.f32 1.442695, %v1878_v40 }
 0xae8   :  { %v1881_v35 = vmul.f32 1.442695, %v1877_v34 }
 0xaea   :  { %5244 = vpow2.f32 %v1881_v35 }
 0xaeb   :  { %5246 = vpow2.f32 %v1883_v41 }
 0xaf4   :  { %v5245_v36 = vpop.eup %5244 }
 0xaf5   :  { %v1889_v37 = vsel %vm364_vm3, %v5245_v36, 0.0  ;;  %v5247_v47 = vpop.eup %5246 }
 0xaf6   :  { %1890 = vadd.xlane.f32.xlu1 %v1889_v37  ;;  %v1892_v49 = vsel %vm364_vm3, %v5247_v47, 0.0 }
 0xb27   :  { %v4652_v42 = vpop.f32.mrb[18].mxu1 }
 0xb28   :  { %v1856_v43 = vpop.f32.mrb[19].mxu1  ;;  %v1874_v46 = vsel %vm364_vm3, %v4652_v42, -inf }
 0xb29   :  { %v1871_v44 = vsel %vm364_vm3, %v1856_v43, -inf }
 0xb2a   :  { %1872 = vmax.xlane.f32.xlu0 %v1871_v44 }
 0xb2e   :  { %1875 = vmax.xlane.f32.xlu0 %v1874_v46 }
 0xb32   :  { %1893 = vadd.xlane.f32.xlu0 %v1892_v49 }
 0xb83   :  { %v1891_v50 = vpop.xlane.xlu1 %1890 }
 0xb84   :  { %5248 = vrcp.f32 %v1891_v50 }
 0xb8e   :  { %v5249_v51 = vpop.eup %5248 }
 0xb8f   :  { %v1902_v52 = vmul.f32 %v5249_v51, %v5245_v36 }
 0xb91   :  { %4657 = vmatprep.mubr.msk.f32.mxu0 %vm364_vm3, %v1902_v52 }
 0xbb7   :  { %v1873_v53 = vpop.xlane.xlu0 %1872 }
 0xbb8   :  { %v1879_v54 = vsub.f32 %v1856_v43, %v1873_v53 }
 0xbba   :  { %v1885_v55 = vmul.f32 1.442695, %v1879_v54 }
 0xbbb   :  { %v1876_v59 = vpop.xlane.xlu0 %1875 }
 0xbbc   :  { %5250 = vpow2.f32 %v1885_v55  ;;  %v1880_v60 = vsub.f32 %v4652_v42, %v1876_v59 }
 0xbbe   :  { %v1887_v57 = vmul.f32 1.442695, %v1880_v60 }
 0xbbf   :  { %v1894_v3 = vpop.xlane.xlu0 %1893 }
 0xbc0   :  { %5252 = vpow2.f32 %v1887_v57 }
 0xbc1   :  { %5254 = vrcp.f32 %v1894_v3 }
 0xbc6   :  { %v5251_v61 = vpop.eup %5250 }
 0xbc7   :  { %v1895_v63 = vsel %vm364_vm3, %v5251_v61, 0.0 }
 0xbc8   :  { %1896 = vadd.xlane.f32.xlu1 %v1895_v63 }
 0xbca   :  { %v5253_v0 = vpop.eup %5252 }
 0xbcb   :  { %v1898_v1 = vsel %vm364_vm3, %v5253_v0, 0.0  ;;  %v5255_v13 = vpop.eup %5254 }
 0xbcc   :  { %1899 = vadd.xlane.f32.xlu0 %v1898_v1  ;;  %v1904_v21 = vmul.f32 %v5255_v13, %v5247_v47 }
 0xbd9   :  { %5107 = vrot.lane.b32.xlu1 %v5501_v48, %s5386_s24 }
 0xbdd   :  { %5117 = vrot.lane.b32.xlu1 %v5499_v45, %s5387_s27 }
 0xbe1   :  { %5122 = vrot.lane.b32.xlu1 %v5504_v56, %s5387_s27 }
 0xbe2   :  { %5112 = vrot.lane.b32.xlu0 %v5508_v58, %s5386_s24 }
 0xbe5   :  { %2188 = vrot.lane.b32.xlu1 %v5521_v4, %s5388_s30 }
 0xbe6   :  { %2186 = vrot.lane.b32.xlu0 %v5495_v39, %s5388_s30 }
 0xbe9   :  { %2279 = vrot.lane.b32.xlu1 %v5533_v6, %s5388_s30 }
 0xbea   :  { %2277 = vrot.lane.b32.xlu0 %v5523_v5, %s5388_s30 }
 0xc55   :  { %v1897_v7 = vpop.xlane.xlu1 %1896 }
 0xc56   :  { %5256 = vrcp.f32 %v1897_v7 }
 0xc59   :  { %v5108_v8 = vpop.permute.xlu1 %5107  ;;  %v1900_v9 = vpop.xlane.xlu0 %1899 }
 0xc5a   :  { %v5110_v10 = vunpack.i.h.bf16 %v5108_v8  ;;  %v5109_v11 = vunpack.i.l.bf16 %v5108_v8  ;;  %5258 = vrcp.f32 %v1900_v9 }
 0xc5c   :  { %v4907_v12 = vpack.c.bf16 %v5110_v10, %v5109_v11 }
 0xc5d   :  { %v5118_v14 = vpop.permute.xlu1 %5117  ;;  %v5113_v15 = vpop.permute.xlu0 %5112 }
 0xc5e   :  { %v5120_v16 = vunpack.i.h.bf16 %v5118_v14  ;;  %v5119_v17 = vunpack.i.l.bf16 %v5118_v14  ;;  %v5115_v18 = vunpack.i.h.bf16 %v5113_v15  ;;  %v5114_v19 = vunpack.i.l.bf16 %v5113_v15  ;;  %4908 = vmatprep.subr.bf16.mxu0 %v4907_v12 }
 0xc5f   :  { %4910 = vmatpush3.bf16.msra.mxu0 %v4907_v12 }
 0xc60   :  { %v5257_v20 = vpop.eup %5256  ;;  %v4911_v22 = vpack.c.bf16 %v5115_v18, %v5114_v19  ;;  %v4915_v25 = vpack.c.bf16 %v5120_v16, %v5119_v17 }
 0xc61   :  { %v5123_v23 = vpop.permute.xlu1 %5122  ;;  %v1906_v24 = vmul.f32 %v5257_v20, %v5251_v61  ;;  %v2187_v31 = vpop.permute.xlu0 %2186 }
 0xc62   :  { %v5125_v26 = vunpack.i.h.bf16 %v5123_v23  ;;  %v5124_v27 = vunpack.i.l.bf16 %v5123_v23  ;;  %4658 = vmatmul.mubr.msk.f32.vlgmr.msra.gmra.mrb[20].mxu0 %vm364_vm3, %v1904_v21  ;;  %4912 = vmatprep.subr.bf16.mxu0 %v4911_v22 }
 0xc63   :  { %4914 = vmatpush3.bf16.msra.mxu0 %v4911_v22  ;;  %4664 = vmatprep.mubr.msk.f32.mxu0 %vm364_vm3, %v1906_v24 }
 0xc64   :  { %v5259_v28 = vpop.eup %5258  ;;  %v4921_v29 = vpack.c.bf16 %v5125_v26, %v5124_v27  ;;  %4917 = vmatprep.subr.msk.bf16.mxu0 %vm5513_vm2, %v4915_v25 }
 0xc65   :  { %v1908_v30 = vmul.f32 %v5259_v28, %v5253_v0  ;;  %v2189_v32 = vpop.permute.xlu1 %2188  ;;  %v2278_v37 = vpop.permute.xlu0 %2277 }
 0xc66   :  { %4923 = vmatprep.subr.msk.bf16.mxu1 %vm5513_vm2, %v4921_v29 }
 0xc67   :  { %4665 = vmatmul.mubr.msk.f32.vlgmr.msra.gmra.mrb[22].mxu0 %vm364_vm3, %v1908_v30 }
 0xc68   :  { %4679 = vmatprep.mubr.msk.f32.mxu0 %vm187_vm1, %v2187_v31 }
 0xc69   :  { %v2280_v38 = vpop.permute.xlu1 %2279 }
 0xc6c   :  { %4920 = vmatpush3.bf16.xpose.msk.msra.mxu0 %vm5513_vm2, %v4915_v25 }
 0xc73   :  { %4680 = vmatmul.mubr.msk.f32.vlgmr.msra.gmra.mrb[24].mxu0 %vm187_vm1, %v2189_v32 }
 0xd35   :  { %v4659_v33 = vpop.f32.mrb[20].mxu0 }
 0xd36   :  { %v1987_v34 = vpop.f32.mrb[21].mxu0 }
 0xd37   :  { %4669 = vmatprep.mubr.msk.f32.mxu1 %vm187_vm1, %v1987_v34 }
 0xd38   :  { %4670 = vmatmul.mubr.msk.f32.vlgmr.msra.gmra.mrb[8].mxu1 %vm187_vm1, %v4659_v33 }
 0xd39   :  { %4926 = vmatpush3.bf16.xpose.msk.msra.mxu1 %vm5513_vm2, %v4921_v29 }
 0xd3a   :  { %v4666_v35 = vpop.f32.mrb[22].mxu0 }
 0xd3b   :  { %v2074_v36 = vpop.f32.mrb[23].mxu0 }
 0xd3c   :  { %4672 = vmatprep.mubr.msk.f32.mxu1 %vm187_vm1, %v2074_v36  ;;  %v4307_v36 = vld [vmem:[%s5900_s3 + $0x20] sm:$0xff] }
 0xd3d   :  { %4673 = vmatmul.mubr.msk.f32.gmra.mrb[10].mxu1 %vm187_vm1, %v4666_v35 }
 0xd3e   :  { %4686 = vmatprep.mubr.msk.f32.mxu1 %vm187_vm1, %v2278_v37 }
 0xd41   :  { %4687 = vmatmul.mubr.msk.f32.vlgmr.msra.gmra.mrb[20].mxu1 %vm187_vm1, %v2280_v38 }
 0xd46   :  { %v4681_v40 = vpop.f32.mrb[24].mxu0 }
 0xd47   :  { %v2268_v41 = vpop.f32.mrb[25].mxu0  ;;  %v2371_v42 = vsel %vm364_vm3, %v4681_v40, -inf }
 0xd48   :  { %2372 = vmax.xlane.f32.xlu1 %v2371_v42  ;;  %v2368_v43 = vsel %vm364_vm3, %v2268_v41, -inf }
 0xd49   :  { %2369 = vmax.xlane.f32.xlu0 %v2368_v43 }
 0xdd5   :  { %v2373_v51 = vpop.xlane.xlu1 %2372 }
 0xdd6   :  { %v2370_v44 = vpop.xlane.xlu0 %2369  ;;  %v2381_v52 = vsub.f32 %v4681_v40, %v2373_v51 }
 0xdd7   :  { %v2380_v46 = vsub.f32 %v2268_v41, %v2370_v44 }
 0xdd8   :  { %v2386_v53 = vmul.f32 1.442695, %v2381_v52 }
 0xdd9   :  { %v2384_v47 = vmul.f32 1.442695, %v2380_v46 }
 0xddb   :  { %5260 = vpow2.f32 %v2384_v47 }
 0xddc   :  { %5262 = vpow2.f32 %v2386_v53 }
 0xde5   :  { %v5261_v49 = vpop.eup %5260 }
 0xde6   :  { %v2392_v50 = vsel %vm364_vm3, %v5261_v49, 0.0  ;;  %v5263_v57 = vpop.eup %5262 }
 0xde7   :  { %2393 = vadd.xlane.f32.xlu1 %v2392_v50  ;;  %v2395_v61 = vsel %vm364_vm3, %v5263_v57, 0.0 }
 0xe14   :  { %v4688_v54 = vpop.f32.mrb[20].mxu1 }
 0xe15   :  { %v2359_v55 = vpop.f32.mrb[21].mxu1  ;;  %v2377_v60 = vsel %vm364_vm3, %v4688_v54, -inf }
 0xe16   :  { %v2374_v59 = vsel %vm364_vm3, %v2359_v55, -inf }
 0xe17   :  { %2375 = vmax.xlane.f32.xlu0 %v2374_v59 }
 0xe1b   :  { %2378 = vmax.xlane.f32.xlu0 %v2377_v60 }
 0xe1f   :  { %2396 = vadd.xlane.f32.xlu0 %v2395_v61 }
 0xe74   :  { %v2394_v63 = vpop.xlane.xlu1 %2393 }
 0xe75   :  { %5264 = vrcp.f32 %v2394_v63 }
 0xe7f   :  { %v5265_v0 = vpop.eup %5264 }
 0xe80   :  { %v2405_v1 = vmul.f32 %v5265_v0, %v5261_v49 }
 0xe82   :  { %4693 = vmatprep.mubr.msk.f32.mxu0 %vm364_vm3, %v2405_v1 }
 0xea4   :  { %v2376_v2 = vpop.xlane.xlu0 %2375 }
 0xea5   :  { %v2382_v3 = vsub.f32 %v2359_v55, %v2376_v2 }
 0xea7   :  { %v2388_v7 = vmul.f32 1.442695, %v2382_v3 }
 0xea8   :  { %v2379_v8 = vpop.xlane.xlu0 %2378 }
 0xea9   :  { %5266 = vpow2.f32 %v2388_v7  ;;  %v2383_v9 = vsub.f32 %v4688_v54, %v2379_v8 }
 0xeab   :  { %v2390_v10 = vmul.f32 1.442695, %v2383_v9 }
 0xeac   :  { %v2397_v15 = vpop.xlane.xlu0 %2396 }
 0xead   :  { %5268 = vpow2.f32 %v2390_v10 }
 0xeae   :  { %5270 = vrcp.f32 %v2397_v15 }
 0xeb3   :  { %v5267_v11 = vpop.eup %5266 }
 0xeb4   :  { %v2398_v12 = vsel %vm364_vm3, %v5267_v11, 0.0 }
 0xeb5   :  { %2399 = vadd.xlane.f32.xlu1 %v2398_v12 }
 0xeb7   :  { %v5269_v13 = vpop.eup %5268 }
 0xeb8   :  { %v2401_v14 = vsel %vm364_vm3, %v5269_v13, 0.0  ;;  %v5271_v22 = vpop.eup %5270 }
 0xeb9   :  { %2402 = vadd.xlane.f32.xlu0 %v2401_v14  ;;  %v2407_v30 = vmul.f32 %v5271_v22, %v5263_v57 }
 0xec6   :  { %5127 = vrot.lane.b32.xlu1 %v5501_v48, %s5388_s30 }
 0xeca   :  { %5137 = vrot.lane.b32.xlu1 %v5499_v45, %s5389_s8 }
 0xece   :  { %5142 = vrot.lane.b32.xlu1 %v5504_v56, %s5389_s8 }
 0xecf   :  { %5132 = vrot.lane.b32.xlu0 %v5508_v58, %s5388_s30 }
 0xed2   :  { %2691 = vrot.lane.b32.xlu1 %v5521_v4, %s5390_s9 }
 0xed3   :  { %2689 = vrot.lane.b32.xlu0 %v5495_v39, %s5390_s9 }
 0xed6   :  { %2782 = vrot.lane.b32.xlu1 %v5533_v6, %s5390_s9 }
 0xed7   :  { %2780 = vrot.lane.b32.xlu0 %v5523_v5, %s5390_s9 }
 0xf42   :  { %v2400_v16 = vpop.xlane.xlu1 %2399 }
 0xf43   :  { %5272 = vrcp.f32 %v2400_v16 }
 0xf46   :  { %v5128_v17 = vpop.permute.xlu1 %5127  ;;  %v2403_v18 = vpop.xlane.xlu0 %2402 }
 0xf47   :  { %v5130_v19 = vunpack.i.h.bf16 %v5128_v17  ;;  %v5129_v20 = vunpack.i.l.bf16 %v5128_v17  ;;  %5274 = vrcp.f32 %v2403_v18 }
 0xf49   :  { %v4927_v21 = vpack.c.bf16 %v5130_v19, %v5129_v20 }
 0xf4a   :  { %v5138_v23 = vpop.permute.xlu1 %5137  ;;  %v5133_v24 = vpop.permute.xlu0 %5132 }
 0xf4b   :  { %v5140_v25 = vunpack.i.h.bf16 %v5138_v23  ;;  %v5139_v26 = vunpack.i.l.bf16 %v5138_v23  ;;  %v5135_v27 = vunpack.i.h.bf16 %v5133_v24  ;;  %v5134_v28 = vunpack.i.l.bf16 %v5133_v24  ;;  %4928 = vmatprep.subr.bf16.mxu0 %v4927_v21 }
 0xf4c   :  { %4930 = vmatpush3.bf16.msra.mxu0 %v4927_v21 }
 0xf4d   :  { %v5273_v29 = vpop.eup %5272  ;;  %v4935_v31 = vpack.c.bf16 %v5140_v25, %v5139_v26  ;;  %v4931_v32 = vpack.c.bf16 %v5135_v27, %v5134_v28  ;;  %v4324_v25 = vld [vmem:[%s5900_s3 + $0x28] sm:$0xff] }
 0xf4e   :  { %v5143_v33 = vpop.permute.xlu1 %5142  ;;  %v2690_v34 = vpop.permute.xlu0 %2689  ;;  %v2409_v35 = vmul.f32 %v5273_v29, %v5267_v11 }
 0xf4f   :  { %4694 = vmatmul.mubr.msk.f32.vlgmr.msra.gmra.mrb[26].mxu0 %vm364_vm3, %v2407_v30  ;;  %4932 = vmatprep.subr.bf16.mxu1 %v4931_v32  ;;  %v5145_v37 = vunpack.i.h.bf16 %v5143_v33  ;;  %v5144_v38 = vunpack.i.l.bf16 %v5143_v33 }
 0xf50   :  { %4937 = vmatprep.subr.msk.bf16.mxu0 %vm5513_vm2, %v4935_v31  ;;  %4934 = vmatpush3.bf16.msra.mxu1 %v4931_v32 }
 0xf51   :  { %v5275_v40 = vpop.eup %5274  ;;  %4700 = vmatprep.mubr.msk.f32.mxu1 %vm364_vm3, %v2409_v35  ;;  %4715 = vmatprep.mubr.msk.f32.mxu0 %vm187_vm1, %v2690_v34  ;;  %v4941_v42 = vpack.c.bf16 %v5145_v37, %v5144_v38 }
 0xf52   :  { %v2411_v41 = vmul.f32 %v5275_v40, %v5269_v13  ;;  %4703 = vmatprep.subr.mxu1 %v4307_v36  ;;  %v2692_v43 = vpop.permute.xlu1 %2691  ;;  %v2781_v50 = vpop.permute.xlu0 %2780 }
 0xf54   :  { %4701 = vmatmul.mubr.msk.f32.vlgmr.msra.gmra.mrb[22].mxu1 %vm364_vm3, %v2411_v41 }
 0xf55   :  { %4704 = vmatpush3.msra.mxu1 %v4307_v36  ;;  %4940 = vmatpush3.bf16.xpose.msk.msra.mxu0 %vm5513_vm2, %v4935_v31 }
 0xf56   :  { %4943 = vmatprep.subr.msk.bf16.mxu1 %vm5513_vm2, %v4941_v42  ;;  %v2783_v51 = vpop.permute.xlu1 %2782 }
 0xf5c   :  { %4716 = vmatmul.mubr.msk.f32.vlgmr.msra.gmra.mrb[28].mxu0 %vm187_vm1, %v2692_v43 }
0x1022   :  { %v4695_v44 = vpop.f32.mrb[26].mxu0 }
0x1023   :  { %v2490_v46 = vpop.f32.mrb[27].mxu0 }
0x1024   :  { %4705 = vmatprep.mubr.msk.f32.mxu1 %vm187_vm1, %v2490_v46 }
0x1025   :  { %4706 = vmatmul.mubr.msk.f32.vlgmr.msra.gmra.mrb[8].mxu1 %vm187_vm1, %v4695_v44 }
0x1026   :  { %4946 = vmatpush3.bf16.xpose.msk.msra.mxu1 %vm5513_vm2, %v4941_v42 }
0x1027   :  { %v4702_v47 = vpop.f32.mrb[22].mxu1  ;;  %4739 = vmatprep.subr.mxu1 %v4324_v25 }
0x1028   :  { %v2577_v49 = vpop.f32.mrb[23].mxu1 }
0x1029   :  { %4708 = vmatprep.mubr.msk.f32.mxu1 %vm187_vm1, %v2577_v49 }
0x102a   :  { %4709 = vmatmul.mubr.msk.f32.gmra.mrb[10].mxu1 %vm187_vm1, %v4702_v47 }
0x102b   :  { %4722 = vmatprep.mubr.msk.f32.mxu1 %vm187_vm1, %v2781_v50 }
0x102e   :  { %4723 = vmatmul.mubr.msk.f32.vlgmr.msra.gmra.mrb[24].mxu1 %vm187_vm1, %v2783_v51 }
0x102f   :  { %v4717_v52 = vpop.f32.mrb[28].mxu0  ;;  %4740 = vmatpush3.msra.mxu1 %v4324_v25 }
0x1030   :  { %v2771_v53 = vpop.f32.mrb[29].mxu0  ;;  %v2874_v54 = vsel %vm364_vm3, %v4717_v52, -inf }
0x1031   :  { %2875 = vmax.xlane.f32.xlu1 %v2874_v54  ;;  %v2871_v55 = vsel %vm364_vm3, %v2771_v53, -inf }
0x1032   :  { %2872 = vmax.xlane.f32.xlu0 %v2871_v55 }
0x10be   :  { %v2876_v0 = vpop.xlane.xlu1 %2875 }
0x10bf   :  { %v2873_v59 = vpop.xlane.xlu0 %2872  ;;  %v2884_v1 = vsub.f32 %v4717_v52, %v2876_v0 }
0x10c0   :  { %v2883_v60 = vsub.f32 %v2771_v53, %v2873_v59 }
0x10c1   :  { %v2889_v2 = vmul.f32 1.442695, %v2884_v1 }
0x10c2   :  { %v2887_v57 = vmul.f32 1.442695, %v2883_v60 }
0x10c4   :  { %5276 = vpow2.f32 %v2887_v57 }
0x10c5   :  { %5278 = vpow2.f32 %v2889_v2 }
0x10ce   :  { %v5277_v61 = vpop.eup %5276 }
0x10cf   :  { %v2895_v63 = vsel %vm364_vm3, %v5277_v61, 0.0  ;;  %v5279_v10 = vpop.eup %5278 }
0x10d0   :  { %2896 = vadd.xlane.f32.xlu1 %v2895_v63  ;;  %v2898_v11 = vsel %vm364_vm3, %v5279_v10, 0.0 }
0x1101   :  { %v4724_v3 = vpop.f32.mrb[24].mxu1 }
0x1102   :  { %v2862_v7 = vpop.f32.mrb[25].mxu1  ;;  %v2880_v9 = vsel %vm364_vm3, %v4724_v3, -inf }
0x1103   :  { %v2877_v8 = vsel %vm364_vm3, %v2862_v7, -inf }
0x1104   :  { %2878 = vmax.xlane.f32.xlu0 %v2877_v8 }
0x1108   :  { %2881 = vmax.xlane.f32.xlu0 %v2880_v9 }
0x110c   :  { %2899 = vadd.xlane.f32.xlu0 %v2898_v11 }
0x115d   :  { %v2897_v12 = vpop.xlane.xlu1 %2896 }
0x115e   :  { %5280 = vrcp.f32 %v2897_v12 }
0x1168   :  { %v5281_v13 = vpop.eup %5280 }
0x1169   :  { %v2908_v14 = vmul.f32 %v5281_v13, %v5277_v61 }
0x116b   :  { %4729 = vmatprep.mubr.msk.f32.mxu0 %vm364_vm3, %v2908_v14 }
0x1191   :  { %v2879_v15 = vpop.xlane.xlu0 %2878 }
0x1192   :  { %v2885_v16 = vsub.f32 %v2862_v7, %v2879_v15 }
0x1194   :  { %v2891_v17 = vmul.f32 1.442695, %v2885_v16 }
0x1195   :  { %v2882_v18 = vpop.xlane.xlu0 %2881 }
0x1196   :  { %5282 = vpow2.f32 %v2891_v17  ;;  %v2886_v19 = vsub.f32 %v4724_v3, %v2882_v18 }
0x1198   :  { %v2893_v20 = vmul.f32 1.442695, %v2886_v19 }
0x1199   :  { %v2900_v26 = vpop.xlane.xlu0 %2899 }
0x119a   :  { %5284 = vpow2.f32 %v2893_v20 }
0x119b   :  { %5286 = vrcp.f32 %v2900_v26 }
0x11a0   :  { %v5283_v21 = vpop.eup %5282 }
0x11a1   :  { %v2901_v22 = vsel %vm364_vm3, %v5283_v21, 0.0 }
0x11a2   :  { %2902 = vadd.xlane.f32.xlu1 %v2901_v22 }
0x11a4   :  { %v5285_v23 = vpop.eup %5284 }
0x11a5   :  { %v2904_v24 = vsel %vm364_vm3, %v5285_v23, 0.0  ;;  %v5287_v33 = vpop.eup %5286 }
0x11a6   :  { %2905 = vadd.xlane.f32.xlu0 %v2904_v24  ;;  %v2910_v42 = vmul.f32 %v5287_v33, %v5279_v10 }
0x11b3   :  { %5147 = vrot.lane.b32.xlu1 %v5501_v48, %s5390_s9 }
0x11b7   :  { %5157 = vrot.lane.b32.xlu1 %v5499_v45, %s5391_s12 }
0x11bb   :  { %5162 = vrot.lane.b32.xlu1 %v5504_v56, %s5391_s12 }
0x11bc   :  { %5152 = vrot.lane.b32.xlu0 %v5508_v58, %s5390_s9 }
0x11bf   :  { %3194 = vrot.lane.b32.xlu1 %v5521_v4, %s5392_s13 }
0x11c0   :  { %3192 = vrot.lane.b32.xlu0 %v5495_v39, %s5392_s13 }
0x11c3   :  { %3285 = vrot.lane.b32.xlu1 %v5533_v6, %s5392_s13 }
0x11c4   :  { %3283 = vrot.lane.b32.xlu0 %v5523_v5, %s5392_s13 }
0x122f   :  { %v2903_v27 = vpop.xlane.xlu1 %2902 }
0x1230   :  { %5288 = vrcp.f32 %v2903_v27 }
0x1233   :  { %v5148_v28 = vpop.permute.xlu1 %5147  ;;  %v2906_v29 = vpop.xlane.xlu0 %2905 }
0x1234   :  { %v5150_v30 = vunpack.i.h.bf16 %v5148_v28  ;;  %v5149_v31 = vunpack.i.l.bf16 %v5148_v28  ;;  %5290 = vrcp.f32 %v2906_v29 }
0x1236   :  { %v4947_v32 = vpack.c.bf16 %v5150_v30, %v5149_v31 }
0x1237   :  { %v5158_v34 = vpop.permute.xlu1 %5157  ;;  %v5153_v35 = vpop.permute.xlu0 %5152 }
0x1238   :  { %v5160_v36 = vunpack.i.h.bf16 %v5158_v34  ;;  %v5159_v37 = vunpack.i.l.bf16 %v5158_v34  ;;  %v5155_v38 = vunpack.i.h.bf16 %v5153_v35  ;;  %v5154_v40 = vunpack.i.l.bf16 %v5153_v35  ;;  %4948 = vmatprep.subr.bf16.mxu0 %v4947_v32 }
0x1239   :  { %4950 = vmatpush3.bf16.msra.mxu0 %v4947_v32 }
0x123a   :  { %v5289_v41 = vpop.eup %5288  ;;  %v4951_v43 = vpack.c.bf16 %v5155_v38, %v5154_v40  ;;  %v4955_v47 = vpack.c.bf16 %v5160_v36, %v5159_v37 }
0x123b   :  { %v5163_v44 = vpop.permute.xlu1 %5162  ;;  %v2912_v46 = vmul.f32 %v5289_v41, %v5283_v21  ;;  %v3193_v54 = vpop.permute.xlu0 %3192 }
0x123c   :  { %v5165_v49 = vunpack.i.h.bf16 %v5163_v44  ;;  %v5164_v50 = vunpack.i.l.bf16 %v5163_v44  ;;  %4730 = vmatmul.mubr.msk.f32.vlgmr.msra.gmra.mrb[30].mxu0 %vm364_vm3, %v2910_v42  ;;  %4952 = vmatprep.subr.bf16.mxu0 %v4951_v43 }
0x123d   :  { %4954 = vmatpush3.bf16.msra.mxu0 %v4951_v43  ;;  %4736 = vmatprep.mubr.msk.f32.mxu0 %vm364_vm3, %v2912_v46 }
0x123e   :  { %v5291_v51 = vpop.eup %5290  ;;  %v4961_v52 = vpack.c.bf16 %v5165_v49, %v5164_v50  ;;  %4957 = vmatprep.subr.msk.bf16.mxu0 %vm5513_vm2, %v4955_v47 }
0x123f   :  { %v2914_v53 = vmul.f32 %v5291_v51, %v5285_v23  ;;  %v3195_v55 = vpop.permute.xlu1 %3194  ;;  %v3284_v63 = vpop.permute.xlu0 %3283 }
0x1240   :  { %4963 = vmatprep.subr.msk.bf16.mxu1 %vm5513_vm2, %v4961_v52 }
0x1241   :  { %4737 = vmatmul.mubr.msk.f32.vlgmr.msra.gmra.mrb[32].mxu0 %vm364_vm3, %v2914_v53  ;;  %v4341_v53 = vld [vmem:[%s5900_s3 + $0x30] sm:$0xff] }
0x1242   :  { %4751 = vmatprep.mubr.msk.f32.mxu0 %vm187_vm1, %v3193_v54 }
0x1243   :  { %v3286_v0 = vpop.permute.xlu1 %3285 }
0x1246   :  { %4960 = vmatpush3.bf16.xpose.msk.msra.mxu0 %vm5513_vm2, %v4955_v47 }
0x124d   :  { %4752 = vmatmul.mubr.msk.f32.vlgmr.msra.gmra.mrb[34].mxu0 %vm187_vm1, %v3195_v55 }
0x130f   :  { %v4731_v59 = vpop.f32.mrb[30].mxu0 }
0x1310   :  { %v2993_v60 = vpop.f32.mrb[31].mxu0 }
0x1311   :  { %4741 = vmatprep.mubr.msk.f32.mxu1 %vm187_vm1, %v2993_v60 }
0x1312   :  { %4742 = vmatmul.mubr.msk.f32.vlgmr.msra.gmra.mrb[8].mxu1 %vm187_vm1, %v4731_v59 }
0x1313   :  { %4966 = vmatpush3.bf16.xpose.msk.msra.mxu1 %vm5513_vm2, %v4961_v52 }
0x1314   :  { %v4738_v57 = vpop.f32.mrb[32].mxu0 }
0x1315   :  { %v3080_v61 = vpop.f32.mrb[33].mxu0 }
0x1316   :  { %4744 = vmatprep.mubr.msk.f32.mxu1 %vm187_vm1, %v3080_v61 }
0x1317   :  { %4745 = vmatmul.mubr.msk.f32.gmra.mrb[10].mxu1 %vm187_vm1, %v4738_v57 }
0x1318   :  { %4758 = vmatprep.mubr.msk.f32.mxu1 %vm187_vm1, %v3284_v63 }
0x131b   :  { %4759 = vmatmul.mubr.msk.f32.vlgmr.msra.gmra.mrb[26].mxu1 %vm187_vm1, %v3286_v0 }
0x1320   :  { %v4753_v1 = vpop.f32.mrb[34].mxu0 }
0x1321   :  { %v3274_v2 = vpop.f32.mrb[35].mxu0  ;;  %v3377_v3 = vsel %vm364_vm3, %v4753_v1, -inf }
0x1322   :  { %3378 = vmax.xlane.f32.xlu1 %v3377_v3  ;;  %v3374_v7 = vsel %vm364_vm3, %v3274_v2, -inf }
0x1323   :  { %3375 = vmax.xlane.f32.xlu0 %v3374_v7 }
0x13af   :  { %v3379_v13 = vpop.xlane.xlu1 %3378 }
0x13b0   :  { %v3376_v8 = vpop.xlane.xlu0 %3375  ;;  %v3387_v14 = vsub.f32 %v4753_v1, %v3379_v13 }
0x13b1   :  { %v3386_v9 = vsub.f32 %v3274_v2, %v3376_v8 }
0x13b2   :  { %v3392_v15 = vmul.f32 1.442695, %v3387_v14 }
0x13b3   :  { %v3390_v10 = vmul.f32 1.442695, %v3386_v9 }
0x13b5   :  { %5292 = vpow2.f32 %v3390_v10 }
0x13b6   :  { %5294 = vpow2.f32 %v3392_v15 }
0x13bf   :  { %v5293_v11 = vpop.eup %5292 }
0x13c0   :  { %v3398_v12 = vsel %vm364_vm3, %v5293_v11, 0.0  ;;  %v5295_v20 = vpop.eup %5294 }
0x13c1   :  { %3399 = vadd.xlane.f32.xlu1 %v3398_v12  ;;  %v3401_v21 = vsel %vm364_vm3, %v5295_v20, 0.0 }
0x13ee   :  { %v4760_v16 = vpop.f32.mrb[26].mxu1 }
0x13ef   :  { %v3365_v17 = vpop.f32.mrb[27].mxu1  ;;  %v3383_v19 = vsel %vm364_vm3, %v4760_v16, -inf }
0x13f0   :  { %v3380_v18 = vsel %vm364_vm3, %v3365_v17, -inf }
0x13f1   :  { %3381 = vmax.xlane.f32.xlu0 %v3380_v18 }
0x13f5   :  { %3384 = vmax.xlane.f32.xlu0 %v3383_v19 }
0x13f9   :  { %3402 = vadd.xlane.f32.xlu0 %v3401_v21 }
0x144e   :  { %v3400_v22 = vpop.xlane.xlu1 %3399 }
0x144f   :  { %5296 = vrcp.f32 %v3400_v22 }
0x1459   :  { %v5297_v23 = vpop.eup %5296 }
0x145a   :  { %v3411_v24 = vmul.f32 %v5297_v23, %v5293_v11 }
0x145c   :  { %4765 = vmatprep.mubr.msk.f32.mxu0 %vm364_vm3, %v3411_v24 }
0x147e   :  { %v3382_v25 = vpop.xlane.xlu0 %3381 }
0x147f   :  { %v3388_v26 = vsub.f32 %v3365_v17, %v3382_v25 }
0x1481   :  { %v3394_v27 = vmul.f32 1.442695, %v3388_v26 }
0x1482   :  { %v3385_v28 = vpop.xlane.xlu0 %3384 }
0x1483   :  { %5298 = vpow2.f32 %v3394_v27  ;;  %v3389_v29 = vsub.f32 %v4760_v16, %v3385_v28 }
0x1485   :  { %v3396_v30 = vmul.f32 1.442695, %v3389_v29 }
0x1487   :  { %5300 = vpow2.f32 %v3396_v30 }
0x148d   :  { %v5299_v31 = vpop.eup %5298 }
0x148e   :  { %v3404_v32 = vsel %vm364_vm3, %v5299_v31, 0.0 }
0x148f   :  { %3405 = vadd.xlane.f32.xlu1 %v3404_v32 }
0x1491   :  { %v5301_v33 = vpop.eup %5300 }
0x1492   :  { %v3407_v34 = vsel %vm364_vm3, %v5301_v33, 0.0 }
0x1493   :  { %3408 = vadd.xlane.f32.xlu0 %v3407_v34 }
0x14a0   :  { %5167 = vrot.lane.b32.xlu1 %v5501_v48, %s5392_s13 }
0x14a4   :  { %5177 = vrot.lane.b32.xlu1 %v5499_v45, %s5378_s29  ;;  %v3403_v45 = vpop.xlane.xlu0 %3402 }
0x14a5   :  { %5302 = vrcp.f32 %v3403_v45 }
0x14a8   :  { %5182 = vrot.lane.b32.xlu1 %v5504_v56, %s5378_s29 }
0x14a9   :  { %5172 = vrot.lane.b32.xlu0 %v5508_v58, %s5392_s13 }
0x14ac   :  { %3697 = vrot.lane.b32.xlu1 %v5521_v4, %s5393_s0 }
0x14ad   :  { %3695 = vrot.lane.b32.xlu0 %v5495_v39, %s5393_s0 }
0x14af   :  { %v5303_v4 = vpop.eup %5302 }
0x14b0   :  { %3788 = vrot.lane.b32.xlu1 %v5533_v6, %s5393_s0  ;;  %v3413_v46 = vmul.f32 %v5303_v4, %v5295_v20 }
0x14b1   :  { %3786 = vrot.lane.b32.xlu0 %v5523_v5, %s5393_s0 }
0x151c   :  { %v3406_v35 = vpop.xlane.xlu1 %3405 }
0x151d   :  { %5304 = vrcp.f32 %v3406_v35 }
0x1520   :  { %v5168_v56 = vpop.permute.xlu1 %5167  ;;  %v3409_v36 = vpop.xlane.xlu0 %3408 }
0x1521   :  { %v5170_v37 = vunpack.i.h.bf16 %v5168_v56  ;;  %v5169_v38 = vunpack.i.l.bf16 %v5168_v56  ;;  %5306 = vrcp.f32 %v3409_v36  ;;  %v4358_v36 = vld [vmem:[%s5900_s3 + $0x38] sm:$0xff] }
0x1523   :  { %v4967_v40 = vpack.c.bf16 %v5170_v37, %v5169_v38 }
0x1524   :  { %v5178_v41 = vpop.permute.xlu1 %5177  ;;  %v5173_v42 = vpop.permute.xlu0 %5172 }
0x1525   :  { %v5180_v39 = vunpack.i.h.bf16 %v5178_v41  ;;  %v5179_v43 = vunpack.i.l.bf16 %v5178_v41  ;;  %v5175_v44 = vunpack.i.h.bf16 %v5173_v42  ;;  %v5174_v6 = vunpack.i.l.bf16 %v5173_v42  ;;  %4968 = vmatprep.subr.bf16.mxu0 %v4967_v40 }
0x1526   :  { %4970 = vmatpush3.bf16.msra.mxu0 %v4967_v40 }
0x1527   :  { %v5305_v5 = vpop.eup %5304  ;;  %v4975_v47 = vpack.c.bf16 %v5180_v39, %v5179_v43  ;;  %v4971_v49 = vpack.c.bf16 %v5175_v44, %v5174_v6 }
0x1528   :  { %v5183_v50 = vpop.permute.xlu1 %5182  ;;  %v3696_v51 = vpop.permute.xlu0 %3695  ;;  %v3415_v52 = vmul.f32 %v5305_v5, %v5299_v31 }
0x1529   :  { %4766 = vmatmul.mubr.msk.f32.vlgmr.msra.gmra.mrb[36].mxu0 %vm364_vm3, %v3413_v46  ;;  %4972 = vmatprep.subr.bf16.mxu1 %v4971_v49  ;;  %v5185_v54 = vunpack.i.h.bf16 %v5183_v50  ;;  %v5184_v55 = vunpack.i.l.bf16 %v5183_v50 }
0x152a   :  { %4977 = vmatprep.subr.msk.bf16.mxu0 %vm5513_vm2, %v4975_v47  ;;  %4974 = vmatpush3.bf16.msra.mxu1 %v4971_v49 }
0x152b   :  { %v5307_v59 = vpop.eup %5306  ;;  %4772 = vmatprep.mubr.msk.f32.mxu1 %vm364_vm3, %v3415_v52  ;;  %4787 = vmatprep.mubr.msk.f32.mxu0 %vm187_vm1, %v3696_v51  ;;  %v4981_v57 = vpack.c.bf16 %v5185_v54, %v5184_v55  ;;  %v4227_v55 = vld [vmem:[%s5901_s4] ss:$0 sm:$0xff]  ;;  %s5350_s4 = scalar_lea.vmem %s4212_s20, 512 }
0x152c   :  { %v3417_v60 = vmul.f32 %v5307_v59, %v5301_v33  ;;  %4775 = vmatprep.subr.mxu1 %v4341_v53  ;;  %v3698_v61 = vpop.permute.xlu1 %3697  ;;  %v3787_v3 = vpop.permute.xlu0 %3786  ;;  %p5351_p8 = scmp.ne.s32.totalorder %s4212_s20, %s5350_s4  ;;  %p5356_p10 = scmp.lt.s32.totalorder %s5350_s4, %s5350_s4 }
0x152e   :  { %4773 = vmatmul.mubr.msk.f32.vlgmr.msra.gmra.mrb[28].mxu1 %vm364_vm3, %v3417_v60  ;;  %p5357_p11 = por %p5356_p10, %p5355_p9 }
0x152f   :  { %4776 = vmatpush3.msra.mxu1 %v4341_v53  ;;  %4980 = vmatpush3.bf16.xpose.msk.msra.mxu0 %vm5513_vm2, %v4975_v47 }
0x1530   :  { %4983 = vmatprep.subr.msk.bf16.mxu1 %vm5513_vm2, %v4981_v57  ;;  %v3789_v7 = vpop.permute.xlu1 %3788  ;;  %p5358_p12 = pnand %p5357_p11, %p5351_p8 }
0x1536   :  { %4788 = vmatmul.mubr.msk.f32.vlgmr.msra.gmra.mrb[38].mxu0 %vm187_vm1, %v3698_v61 }
0x15fc   :  { %v4767_v63 = vpop.f32.mrb[36].mxu0 }
0x15fd   :  { %v3496_v0 = vpop.f32.mrb[37].mxu0 }
0x15fe   :  { %4777 = vmatprep.mubr.msk.f32.mxu1 %vm187_vm1, %v3496_v0 }
0x15ff   :  { %4778 = vmatmul.mubr.msk.f32.vlgmr.msra.gmra.mrb[8].mxu1 %vm187_vm1, %v4767_v63  ;;  %v5324_v63 = vld [vmem:[#allocation2 + $0x8] sm:$0xff] }
0x1600   :  { %4986 = vmatpush3.bf16.xpose.msk.msra.mxu1 %vm5513_vm2, %v4981_v57 }
0x1601   :  { %v4774_v1 = vpop.f32.mrb[28].mxu1  ;;  %4811 = vmatprep.subr.mxu1 %v4358_v36 }
0x1602   :  { %v3583_v2 = vpop.f32.mrb[29].mxu1 }
0x1603   :  { %4780 = vmatprep.mubr.msk.f32.mxu1 %vm187_vm1, %v3583_v2 }
0x1604   :  { %4781 = vmatmul.mubr.msk.f32.gmra.mrb[10].mxu1 %vm187_vm1, %v4774_v1  ;;  %v5325_v1 = vld [vmem:[#allocation2] sm:$0xff] }
0x1605   :  { %4794 = vmatprep.mubr.msk.f32.mxu1 %vm187_vm1, %v3787_v3 }
0x1608   :  { %4795 = vmatmul.mubr.msk.f32.vlgmr.msra.gmra.mrb[30].mxu1 %vm187_vm1, %v3789_v7 }
0x1609   :  { %v4789_v8 = vpop.f32.mrb[38].mxu0  ;;  %4812 = vmatpush3.msra.mxu1 %v4358_v36 }
0x160a   :  { %v3777_v9 = vpop.f32.mrb[39].mxu0  ;;  %v3880_v10 = vsel %vm364_vm3, %v4789_v8, -inf }
0x160b   :  { %3881 = vmax.xlane.f32.xlu1 %v3880_v10  ;;  %v3877_v62 = vsel %vm364_vm3, %v3777_v9, -inf  ;;  %v5326_v10 = vld [vmem:[#allocation2 + $0x18] sm:$0xff] }
0x160c   :  { %3878 = vmax.xlane.f32.xlu0 %v3877_v62 }
0x1698   :  { %v3882_v16 = vpop.xlane.xlu1 %3881 }
0x1699   :  { %v3879_v11 = vpop.xlane.xlu0 %3878  ;;  %v3890_v17 = vsub.f32 %v4789_v8, %v3882_v16 }
0x169a   :  { %v3889_v12 = vsub.f32 %v3777_v9, %v3879_v11  ;;  %v5327_v11 = vld [vmem:[#allocation2 + $0x10] sm:$0xff] }
0x169b   :  { %v3895_v18 = vmul.f32 1.442695, %v3890_v17 }
0x169c   :  { %v3893_v13 = vmul.f32 1.442695, %v3889_v12 }
0x169e   :  { %5308 = vpow2.f32 %v3893_v13 }
0x169f   :  { %5310 = vpow2.f32 %v3895_v18 }
0x16a8   :  { %v5309_v14 = vpop.eup %5308 }
0x16a9   :  { %v3901_v15 = vsel %vm364_vm3, %v5309_v14, 0.0  ;;  %v5311_v23 = vpop.eup %5310 }
0x16aa   :  { %3902 = vadd.xlane.f32.xlu1 %v3901_v15  ;;  %v3904_v24 = vsel %vm364_vm3, %v5311_v23, 0.0 }
0x16db   :  { %v4796_v19 = vpop.f32.mrb[30].mxu1 }
0x16dc   :  { %v3868_v20 = vpop.f32.mrb[31].mxu1  ;;  %v3886_v22 = vsel %vm364_vm3, %v4796_v19, -inf }
0x16dd   :  { %v3883_v21 = vsel %vm364_vm3, %v3868_v20, -inf }
0x16de   :  { %3884 = vmax.xlane.f32.xlu0 %v3883_v21 }
0x16e2   :  { %3887 = vmax.xlane.f32.xlu0 %v3886_v22 }
0x16e6   :  { %3905 = vadd.xlane.f32.xlu0 %v3904_v24 }
0x1737   :  { %v3903_v25 = vpop.xlane.xlu1 %3902 }
0x1738   :  { %5312 = vrcp.f32 %v3903_v25 }
0x1742   :  { %v5313_v26 = vpop.eup %5312 }
0x1743   :  { %v3914_v27 = vmul.f32 %v5313_v26, %v5309_v14 }
0x1745   :  { %4801 = vmatprep.mubr.msk.f32.mxu0 %vm364_vm3, %v3914_v27 }
0x176b   :  { %v3885_v28 = vpop.xlane.xlu0 %3884 }
0x176c   :  { %v3891_v29 = vsub.f32 %v3868_v20, %v3885_v28 }
0x176e   :  { %v3897_v30 = vmul.f32 1.442695, %v3891_v29 }
0x176f   :  { %v3888_v31 = vpop.xlane.xlu0 %3887 }
0x1770   :  { %5314 = vpow2.f32 %v3897_v30  ;;  %v3892_v32 = vsub.f32 %v4796_v19, %v3888_v31 }
0x1772   :  { %v3899_v33 = vmul.f32 1.442695, %v3892_v32 }
0x1773   :  { %v3906_v37 = vpop.xlane.xlu0 %3905 }
0x1774   :  { %5316 = vpow2.f32 %v3899_v33 }
0x1775   :  { %5318 = vrcp.f32 %v3906_v37 }
0x177a   :  { %v5315_v34 = vpop.eup %5314 }
0x177b   :  { %v3907_v45 = vsel %vm364_vm3, %v5315_v34, 0.0 }
0x177c   :  { %3908 = vadd.xlane.f32.xlu1 %v3907_v45 }
0x177e   :  { %v5317_v35 = vpop.eup %5316 }
0x177f   :  { %v3910_v56 = vsel %vm364_vm3, %v5317_v35, 0.0 }
0x1780   :  { %3911 = vadd.xlane.f32.xlu0 %v3910_v56 }
0x178d   :  { %5187 = vrot.lane.b32.xlu1 %v5501_v48, %s5393_s0  ;;  %v5319_v48 = vpop.eup %5318 }
0x178e   :  { %v3916_v5 = vmul.f32 %v5319_v48, %v5311_v23 }
0x1796   :  { %5192 = vrot.lane.b32.xlu0 %v5508_v58, %s5393_s0 }
0x1809   :  { %v3909_v38 = vpop.xlane.xlu1 %3908 }
0x180a   :  { %5320 = vrcp.f32 %v3909_v38 }
0x180d   :  { %v5188_v40 = vpop.permute.xlu1 %5187  ;;  %v3912_v4 = vpop.xlane.xlu0 %3911 }
0x180e   :  { %v5190_v41 = vunpack.i.h.bf16 %v5188_v40  ;;  %v5189_v42 = vunpack.i.l.bf16 %v5188_v40  ;;  %5322 = vrcp.f32 %v3912_v4 }
0x1810   :  { %v4987_v39 = vpack.c.bf16 %v5190_v41, %v5189_v42 }
0x1811   :  { %v5193_v43 = vpop.permute.xlu0 %5192 }
0x1812   :  { %v5195_v44 = vunpack.i.h.bf16 %v5193_v43  ;;  %v5194_v58 = vunpack.i.l.bf16 %v5193_v43  ;;  %4988 = vmatprep.subr.bf16.mxu0 %v4987_v39 }
0x1813   :  { %4990 = vmatpush3.bf16.msra.mxu0 %v4987_v39 }
0x1814   :  { %v5321_v6 = vpop.eup %5320  ;;  %v4991_v46 = vpack.c.bf16 %v5195_v44, %v5194_v58 }
0x1815   :  { %v3918_v47 = vmul.f32 %v5321_v6, %v5315_v34 }
0x1816   :  { %4802 = vmatmul.mubr.msk.f32.vlgmr.msra.gmra.mrb[40].mxu0 %vm364_vm3, %v3916_v5  ;;  %4992 = vmatprep.subr.bf16.mxu0 %v4991_v46 }
0x1817   :  { %4994 = vmatpush3.bf16.msra.mxu0 %v4991_v46  ;;  %4808 = vmatprep.mubr.msk.f32.mxu0 %vm364_vm3, %v3918_v47 }
0x1818   :  { %v5323_v49 = vpop.eup %5322 }
0x1819   :  { %v3920_v50 = vmul.f32 %v5323_v49, %v5317_v35 }
0x181b   :  { %4809 = vmatmul.mubr.msk.f32.vlgmr.msra.gmra.mrb[42].mxu0 %vm364_vm3, %v3920_v50 }
0x18e9   :  { %v4803_v51 = vpop.f32.mrb[40].mxu0 }
0x18ea   :  { %v3999_v52 = vpop.f32.mrb[41].mxu0 }
0x18eb   :  { %4813 = vmatprep.mubr.msk.f32.mxu1 %vm187_vm1, %v3999_v52 }
0x18ec   :  { %4814 = vmatmul.mubr.msk.f32.vlgmr.msra.gmra.mrb[8].mxu1 %vm187_vm1, %v4803_v51 }
0x18ee   :  { %v4810_v53 = vpop.f32.mrb[42].mxu0 }
0x18ef   :  { %v4086_v54 = vpop.f32.mrb[43].mxu0 }
0x18f0   :  { %4816 = vmatprep.mubr.msk.f32.mxu1 %vm187_vm1, %v4086_v54 }
0x18f1   :  { %4817 = vmatmul.mubr.msk.f32.gmra.mrb[10].mxu1 %vm187_vm1, %v4810_v53 }
0x19bf   :  { %v4815_v59 = vpop.f32.mrb[8].mxu1 }
0x19c0   :  { %v4995_v60 = vadd.f32 %v4815_v59, %v4227_v55  ;;  %v4175_v57 = vpop.f32.mrb[9].mxu1 }
0x19c1   :  { %v4996_v61 = vadd.f32 %v4227_v55, %v4175_v57 }
0x19c2   :  { %v4199_v0 = vadd.f32 %v5324_v63, %v4995_v60 }
0x19c3   :  { %v4198_v2 = vadd.f32 %v5325_v1, %v4996_v61 }
0x19c4   :  { %4203 = vst.msk [vmem:[#allocation5 + $0x8] sm:$0xff] %vm67_vm0, %v4199_v0  ;;  %v4818_v3 = vpop.f32.mrb[10].mxu1 }
0x19c5   :  { %4202 = vst.msk [vmem:[#allocation5] sm:$0xff] %vm67_vm0, %v4198_v2  ;;  %v4997_v7 = vadd.f32 %v4818_v3, %v4227_v55  ;;  %v4185_v8 = vpop.f32.mrb[11].mxu1 }
0x19c6   :  { %v4998_v9 = vadd.f32 %v4227_v55, %v4185_v8 }
0x19c7   :  { %v4201_v62 = vadd.f32 %v5326_v10, %v4997_v7 }
0x19c8   :  { %v4200_v12 = vadd.f32 %v5327_v11, %v4998_v9 }
0x19c9   :  { %4205 = vst.msk [vmem:[#allocation5 + $0x18] sm:$0xff] %vm67_vm0, %v4201_v62 }
0x19ca   :  { %4204 = vst.msk [vmem:[#allocation5 + $0x10] sm:$0xff] %vm67_vm0, %v4200_v12 }
0x19cb   :  { %5361 = shalt.err (!%p5358_p12)
}
0x19cc   :  { %s5362_s23 = scalar_lea.hbm %s5902_s5, 512 }
0x19cd   :  { %p5363_p13 = scmp.ne.s32.totalorder %s5902_s5, %s5362_s23  ;;  %p5366_p0 = scmp.lt.u32.totalorder %s5362_s23, %s5902_s5 }
0x19cf   :  { %p5368_p1 = pnand %p5366_p0, %p5363_p13 }
0x19d1   :  { %5371 = shalt.err (!%p5368_p1)
}
0x19d2   :  { %4217 = dma.vmem_to_hbm [thread:$0]  %s4212_s20, 512, %s5902_s5, [#allocation4], %s5377_s28, %s5377_s28, %s5378_s29  }
0x19d3   :  { %5374 = dma.done.wait [#allocation4], 512  }
0x19d4   :  { %5375 = vsyncadd [#allocation4], 4294966784 }
0x19d5   :  { %4221 = vsyncpa [#allocation3], 1 }
0x19d6   :  { %4222 = vsyncpa [#allocation4], 1 }

</bundles_post_ra>
